<compile_context>
chip_gen: v6e
topology: v6e:2x2x1
jax: 0.10.0
libtpu: 0.0.40
codegen_flags: <defaults>
</compile_context>

<pallas_src>
import math

import jax
import jax.numpy as jnp
from jax.experimental import pallas as pl
from jax.experimental.pallas import tpu as pltpu

ENC_DIM = 512        # encoder_dim hard-coded in AttSegmentator.__init__
NUM_CLASSES_IN = 5   # class_encoder = nn.Linear(5, 512)


def _att_kernel(vcls_ref, w_ref, b_ref, vals_ref, ctx_ref, alpha_ref):
    """One grid step == one batch element.

    vcls_ref : (1, 1, K)  class vector (one-hot), f32
    w_ref    : (C, K)     class_encoder weight, PyTorch (out, in) layout, f32 (resident)
    b_ref    : (C, 1)     class_encoder bias as a column, f32 (resident)
    vals_ref : (1, C, N)  encoder features for this batch element, bf16
    ctx_ref  : (1, C, N)  attention-gated features (output), bf16
    alpha_ref: (1, 1, N)  attention weights (output), f32
    """
    C = w_ref.shape[0]
    inv_sqrt_c = 1.0 / math.sqrt(C)

    # class_encoder Linear fused in-kernel (tiny VPU + 5-lane XLU reduce, hidden under DMA):
    # cls_col[c] = sum_k W[c, k] * v_class[k] + b[c]                       -> (C, 1)
    cls_col = (jnp.sum(w_ref[...] * vcls_ref[0], axis=-1, keepdims=True)
               + b_ref[...])                                                # (C, 1) f32

    # Scaled dot-product scores over the N spatial positions as a VPU multiply +
    # sublane (XLU) reduce -- no M=1 MXU matmul.  vals is streamed from the ref per use.
    scores = jnp.sum(vals_ref[0].astype(jnp.float32) * cls_col,
                     axis=0, keepdims=True) * inv_sqrt_c                    # (1, N) f32

    # Softmax over the N spatial positions (lane-major cross-lane reduces on one row).
    # Exact reciprocal so every alpha row sums to exactly 1.0.
    m = jnp.max(scores, axis=-1, keepdims=True)
    e = jnp.exp(scores - m)
    alpha = e * pl.reciprocal(jnp.sum(e, axis=-1, keepdims=True), approx=False)  # (1, N)

    # Gating: ctx[c, n] = alpha[n] * vals[c, n]. Full-tile, lane-dense bf16 store.
    # f32 multiply for v5e portability (no bf16 VALU there); v6e/v7x handle it either way.
    ctx_ref[0] = (vals_ref[0].astype(jnp.float32) * alpha).astype(ctx_ref.dtype)
    alpha_ref[0] = alpha


def att_segmentator_forward(enc_feat_nchw, v_class, w_cls, b_cls):
    """enc_feat_nchw: (B, C, H, W) frozen encoder 'layer4' features (any float dtype).
    v_class:        (B, 5)     one-hot class vector
    w_cls:          (512, 5)   class_encoder weight, PyTorch (out_features, in_features)
    b_cls:          (512,)     class_encoder bias
    Returns (attention-gated features (B, C, H, W) bf16, attention_alpha (B, 1, H, W) f32).
    """
    B, C, H, W = enc_feat_nchw.shape
    N = H * W
    K = w_cls.shape[1]

    # Free reshapes only (NCHW is already contiguous as (B, C, H*W)); bf16 I/O halves
    # the HBM traffic of this bandwidth-bound kernel.
    vals = enc_feat_nchw.reshape(B, C, N).astype(jnp.bfloat16)
    vcls = v_class.astype(jnp.float32).reshape(B, 1, K)
    wmat = w_cls.astype(jnp.float32)
    bcol = b_cls.astype(jnp.float32).reshape(C, 1)

    ctx, alpha = pl.pallas_call(
        _att_kernel,
        out_shape=(jax.ShapeDtypeStruct((B, C, N), jnp.bfloat16),
                   jax.ShapeDtypeStruct((B, 1, N), jnp.float32)),
        grid_spec=pltpu.PrefetchScalarGridSpec(
            num_scalar_prefetch=0,
            grid=(B,),  # batch on the grid: double-buffered DMA; sharded across v7x cores
            in_specs=[
                pl.BlockSpec((1, 1, K), lambda b: (b, 0, 0)),   # v_class row
                pl.BlockSpec((C, K), lambda b: (0, 0)),          # weight (resident)
                pl.BlockSpec((C, 1), lambda b: (0, 0)),          # bias column (resident)
                pl.BlockSpec((1, C, N), lambda b: (b, 0, 0)),    # vals, bf16
            ],
            out_specs=[
                pl.BlockSpec((1, C, N), lambda b: (b, 0, 0)),    # ctx, bf16
                pl.BlockSpec((1, 1, N), lambda b: (b, 0, 0)),    # alpha, f32
            ],
        ),
        compiler_params=pltpu.CompilerParams(dimension_semantics=("parallel",)),
        # ctx reuses the enc_feat HBM buffer (input is dead after the call).
        input_output_aliases={3: 0},
    )(vcls, wmat, bcol, vals)

    # Free reshapes back to the PyTorch shapes (no data movement).
    enc_feat_att = ctx.reshape(B, C, H, W)          # attention_context.permute+view
    attention_alpha = alpha.reshape(B, 1, H, W)     # attention_alpha.view(-1,1,H,W)
    return enc_feat_att, attention_alpha


def _reference_forward(enc_feat_nchw, v_class, w_cls, b_cls):
    """Pure-JAX reference written in the same order as the PyTorch module (f32)."""
    B, C, H, W = enc_feat_nchw.shape
    N = H * W
    vals = jnp.transpose(enc_feat_nchw, (0, 2, 3, 1)).reshape(B, N, C)
    class_vec = v_class @ w_cls.T + b_cls
    scores = jnp.einsum('bnc,bc->bn', vals, class_vec,
                        precision=jax.lax.Precision.HIGHEST) / jnp.sqrt(jnp.float32(C))
    alpha = jax.nn.softmax(scores, axis=1)
    ctx = vals * alpha[..., None]
    enc_att = jnp.transpose(ctx.reshape(B, H, W, C), (0, 3, 1, 2))
    return enc_att, alpha.reshape(B, 1, H, W)


if __name__ == "__main__":
    key = jax.random.PRNGKey(0)
    k1, k2, k3 = jax.random.split(key, 3)

    # Shapes consistent with the module: default img_size=(512,512) -> layer4 at stride 32
    # gives a (B, 512, 16, 16) feature map; class vector is 5-dim (nn.Linear(5, 512)).
    B, C, H, W = 2, ENC_DIM, 16, 16
    enc_feat = jax.random.normal(k1, (B, C, H, W), dtype=jnp.float32)
    v_class = jax.nn.one_hot(jnp.array([1, 3]), NUM_CLASSES_IN, dtype=jnp.float32)

    # Deterministic class_encoder parameters, PyTorch (out_features, in_features) layout.
    w_cls = 0.02 * jax.random.normal(k2, (ENC_DIM, NUM_CLASSES_IN), dtype=jnp.float32)
    b_cls = 0.01 * jax.random.normal(k3, (ENC_DIM,), dtype=jnp.float32)

    enc_bf16 = enc_feat.astype(jnp.bfloat16)
    # Materialize the f32 copy for the reference BEFORE the (buffer-donating) kernel call.
    enc_ref_f32 = enc_bf16.astype(jnp.float32)

    enc_att, alpha = att_segmentator_forward(enc_bf16, v_class, w_cls, b_cls)
    jax.block_until_ready((enc_att, alpha))

    ref_att, ref_alpha = _reference_forward(enc_ref_f32, v_class, w_cls, b_cls)

    assert enc_att.shape == (B, C, H, W) and enc_att.dtype == jnp.bfloat16
    assert alpha.shape == (B, 1, H, W) and alpha.dtype == jnp.float32
    # ctx is stored in bf16 -> tolerance covers the output rounding only.
    assert jnp.allclose(enc_att.astype(jnp.float32), ref_att, rtol=2e-2, atol=2e-3)
    assert jnp.allclose(alpha, ref_alpha, rtol=1e-3, atol=1e-6)
    # Exact reciprocal -> each attention map sums to 1.
    assert jnp.allclose(jnp.sum(alpha, axis=(1, 2, 3)), 1.0, atol=1e-5)

    print("KERNEL_OK")
</pallas_src>

<mosaic_0001>
module attributes {stable_mosaic.version = 11 : i64} {
  func.func @_att_kernel(%arg0: i32, %arg1: memref<1x1x5xf32, #tpu.memory_space<vmem>>, %arg2: memref<512x5xf32, #tpu.memory_space<vmem>>, %arg3: memref<512x1xf32, #tpu.memory_space<vmem>>, %arg4: memref<1x512x256xbf16, #tpu.memory_space<vmem>>, %arg5: memref<1x512x256xbf16, #tpu.memory_space<vmem>>, %arg6: memref<1x1x256xf32, #tpu.memory_space<vmem>>) attributes {dimension_semantics = [#tpu.dimension_semantics<parallel>], iteration_bounds = array<i64: 2>, scalar_prefetch = 0 : i64, scratch_operands = 0 : i64, tpu.core_type = #tpu.core_type<tc>, window_params = [{transform_indices = @transform_0, window_bounds = array<i64: 1, 1, 5>}, {pipeline_mode = #tpu.pipeline_mode<synchronous>, transform_indices = @transform_1, window_bounds = array<i64: 512, 5>}, {pipeline_mode = #tpu.pipeline_mode<synchronous>, transform_indices = @transform_2, window_bounds = array<i64: 512, 1>}, {transform_indices = @transform_3, window_bounds = array<i64: 1, 512, 256>}, {transform_indices = @transform_4, window_bounds = array<i64: 1, 512, 256>}, {transform_indices = @transform_5, window_bounds = array<i64: 1, 1, 256>}]} {
    %c0 = arith.constant 0 : index
    %c0_0 = arith.constant 0 : index
    %0 = vector.load %arg2[%c0, %c0_0] : memref<512x5xf32, #tpu.memory_space<vmem>>, vector<512x5xf32>
    %c0_1 = arith.constant 0 : index
    %c0_2 = arith.constant 0 : index
    %c0_3 = arith.constant 0 : index
    %1 = vector.load %arg1[%c0_1, %c0_2, %c0_3] : memref<1x1x5xf32, #tpu.memory_space<vmem>>, vector<1x1x5xf32>
    %2 = vector.shape_cast %1 : vector<1x1x5xf32> to vector<1x5xf32>
    %3 = vector.broadcast %2 : vector<1x5xf32> to vector<512x5xf32>
    %4 = arith.mulf %0, %3 : vector<512x5xf32>
    %cst = arith.constant dense<0.000000e+00> : vector<512xf32>
    %5 = vector.multi_reduction <add>, %4, %cst [1] : vector<512x5xf32> to vector<512xf32>
    %6 = vector.shape_cast %5 : vector<512xf32> to vector<512x1xf32>
    %c0_4 = arith.constant 0 : index
    %c0_5 = arith.constant 0 : index
    %7 = vector.load %arg3[%c0_4, %c0_5] : memref<512x1xf32, #tpu.memory_space<vmem>>, vector<512x1xf32>
    %8 = arith.addf %6, %7 : vector<512x1xf32>
    %c0_6 = arith.constant 0 : index
    %c0_7 = arith.constant 0 : index
    %c0_8 = arith.constant 0 : index
    %9 = vector.load %arg4[%c0_6, %c0_7, %c0_8] : memref<1x512x256xbf16, #tpu.memory_space<vmem>>, vector<1x512x256xbf16>
    %10 = vector.shape_cast %9 : vector<1x512x256xbf16> to vector<512x256xbf16>
    %11 = arith.extf %10 : vector<512x256xbf16> to vector<512x256xf32>
    %12 = vector.broadcast %8 : vector<512x1xf32> to vector<512x256xf32>
    %13 = arith.mulf %11, %12 : vector<512x256xf32>
    %cst_9 = arith.constant dense<0.000000e+00> : vector<256xf32>
    %14 = vector.multi_reduction <add>, %13, %cst_9 [0] : vector<512x256xf32> to vector<256xf32>
    %15 = vector.shape_cast %14 : vector<256xf32> to vector<1x256xf32>
    %cst_10 = arith.constant 0.0441941731 : f32
    %16 = vector.broadcast %cst_10 : f32 to vector<1x256xf32>
    %17 = arith.mulf %15, %16 : vector<1x256xf32>
    %cst_11 = arith.constant dense<0xFF800000> : vector<1xf32>
    %18 = vector.multi_reduction <maximumf>, %17, %cst_11 [1] : vector<1x256xf32> to vector<1xf32>
    %19 = vector.shape_cast %18 : vector<1xf32> to vector<1x1xf32>
    %20 = vector.broadcast %19 : vector<1x1xf32> to vector<1x256xf32>
    %21 = arith.subf %17, %20 : vector<1x256xf32>
    %22 = math.exp %21 : vector<1x256xf32>
    %cst_12 = arith.constant dense<0.000000e+00> : vector<1xf32>
    %23 = vector.multi_reduction <add>, %22, %cst_12 [1] : vector<1x256xf32> to vector<1xf32>
    %24 = vector.shape_cast %23 : vector<1xf32> to vector<1x1xf32>
    %25 = tpu.reciprocal %24 : vector<1x1xf32> -> vector<1x1xf32>
    %26 = vector.broadcast %25 : vector<1x1xf32> to vector<1x256xf32>
    %27 = arith.mulf %22, %26 : vector<1x256xf32>
    %c0_13 = arith.constant 0 : index
    %c0_14 = arith.constant 0 : index
    %c0_15 = arith.constant 0 : index
    %28 = vector.load %arg4[%c0_13, %c0_14, %c0_15] : memref<1x512x256xbf16, #tpu.memory_space<vmem>>, vector<1x512x256xbf16>
    %29 = vector.shape_cast %28 : vector<1x512x256xbf16> to vector<512x256xbf16>
    %30 = arith.extf %29 : vector<512x256xbf16> to vector<512x256xf32>
    %31 = vector.broadcast %27 : vector<1x256xf32> to vector<512x256xf32>
    %32 = arith.mulf %30, %31 : vector<512x256xf32>
    %33 = arith.truncf %32 : vector<512x256xf32> to vector<512x256xbf16>
    %c0_16 = arith.constant 0 : index
    %c0_17 = arith.constant 0 : index
    %c0_18 = arith.constant 0 : index
    %34 = vector.load %arg5[%c0_16, %c0_17, %c0_18] : memref<1x512x256xbf16, #tpu.memory_space<vmem>>, vector<1x512x256xbf16>
    %35 = vector.shape_cast %34 : vector<1x512x256xbf16> to vector<512x256xbf16>
    %36 = vector.shape_cast %33 : vector<512x256xbf16> to vector<1x512x256xbf16>
    tpu.vector_store %arg5[%c0_16, %c0_17, %c0_18], %36 {strides = array<i32>} : memref<1x512x256xbf16, #tpu.memory_space<vmem>>, vector<1x512x256xbf16>,
    %c0_19 = arith.constant 0 : index
    %c0_20 = arith.constant 0 : index
    %c0_21 = arith.constant 0 : index
    %37 = vector.load %arg6[%c0_19, %c0_20, %c0_21] : memref<1x1x256xf32, #tpu.memory_space<vmem>>, vector<1x1x256xf32>
    %38 = vector.shape_cast %37 : vector<1x1x256xf32> to vector<1x256xf32>
    %39 = vector.shape_cast %27 : vector<1x256xf32> to vector<1x1x256xf32>
    tpu.vector_store %arg6[%c0_19, %c0_20, %c0_21], %39 {strides = array<i32>} : memref<1x1x256xf32, #tpu.memory_space<vmem>>, vector<1x1x256xf32>,
    return
  }
  func.func @transform_0(%arg0: i32) -> (i32, i32, i32) {
    %c0_i32 = arith.constant 0 : i32
    %c0_i32_0 = arith.constant 0 : i32
    %c0_i32_1 = arith.constant 0 : i32
    return %arg0, %c0_i32, %c0_i32_0 : i32, i32, i32
  }
  func.func @transform_1(%arg0: i32) -> (i32, i32) {
    %c0_i32 = arith.constant 0 : i32
    %c0_i32_0 = arith.constant 0 : i32
    %c0_i32_1 = arith.constant 0 : i32
    return %c0_i32, %c0_i32_0 : i32, i32
  }
  func.func @transform_2(%arg0: i32) -> (i32, i32) {
    %c0_i32 = arith.constant 0 : i32
    %c0_i32_0 = arith.constant 0 : i32
    %c0_i32_1 = arith.constant 0 : i32
    return %c0_i32, %c0_i32_0 : i32, i32
  }
  func.func @transform_3(%arg0: i32) -> (i32, i32, i32) {
    %c0_i32 = arith.constant 0 : i32
    %c0_i32_0 = arith.constant 0 : i32
    %c0_i32_1 = arith.constant 0 : i32
    return %arg0, %c0_i32, %c0_i32_0 : i32, i32, i32
  }
  func.func @transform_4(%arg0: i32) -> (i32, i32, i32) {
    %c0_i32 = arith.constant 0 : i32
    %c0_i32_0 = arith.constant 0 : i32
    %c0_i32_1 = arith.constant 0 : i32
    return %arg0, %c0_i32, %c0_i32_0 : i32, i32, i32
  }
  func.func @transform_5(%arg0: i32) -> (i32, i32, i32) {
    %c0_i32 = arith.constant 0 : i32
    %c0_i32_0 = arith.constant 0 : i32
    %c0_i32_1 = arith.constant 0 : i32
    return %arg0, %c0_i32, %c0_i32_0 : i32, i32, i32
  }
}

</mosaic_0001>

<bundles_post_ra>
// kernel: tpu_custom_call.1
= control target key start
LH: loop header
LB: loop body
LE: loop exit
PB: predicated region body
PF: predicated region fallthrough
CT: control target
= control target key end

     0   :  { %11 = vsyncpa [#allocation3], 0  ;;  %s4810_s0 = inlined_call_operand.vmem [shape: f32[2,1,5], index: 0, kind: input, shape index: {}]   ;;  %s4811_s1 = inlined_call_operand.vmem [shape: f32[512,5], index: 1, kind: input, shape index: {}]   ;;  %s4812_s2 = inlined_call_operand.vmem [shape: f32[512,1], index: 2, kind: input, shape index: {}]   ;;  %s4813_s3 = inlined_call_operand.hbm [shape: bf16[2,512,256], index: 3, kind: input, shape index: {}, may-alias: {3,4}]   ;;  %s4814_s4 = inlined_call_operand.hbm [shape: bf16[2,512,256], index: 4, kind: output, shape index: {0}, may-alias: {3,4}]   ;;  %s4815_s5 = inlined_call_operand.hbm [shape: f32[2,1,256], index: 5, kind: output, shape index: {1}]  }
   0x1   :  { %13 = vsyncpa [#allocation3 + $0x1], 0 }
   0x2   :  { %14 = vsyncpa [#allocation4], 0 }
   0x3   :  { %16 = vsyncpa [#allocation4 + $0x1], 0 }
   0x4   :  { %17 = vsyncpa [#allocation7], 0 }
   0x5   :  { %19 = vsyncpa [#allocation7 + $0x1], 0  ;;  %s2643_s18 = smov 0   ;;  %s2645_s19 = smov 0  }
   0x6   :  { %s2647_s20 = smov 0   ;;  %s2649_s21 = smov 0  }
   0x7 LB: > { %s2664_s22 = sadd.s32 4294967295, %s2602_s21   ;;  %s2265_s23 = sadd.s32 4294967294, %s2602_s21   ;;  %s2602_s21 = sphi %s2649_s21, %s5333_s21   ;;  %s2598_s20 = sphi %s2647_s20, %s5332_s20   ;;  %s2594_s19 = sphi %s2645_s19, %s5331_s19   ;;  %s2590_s18 = sphi %s2643_s18, %s5330_s18  }
   0x8   : > { %s2668_s24 = sadd.s32 1, %s2602_s21   ;;  %s100_s25 = sadd.s32 1, %s2598_s20 }
   0x9   : > { %s97_s26 = ssub.s32 %s2602_s21, %s2668_s24  ;;  %p107_p0 = scmp.ne.s32.totalorder %s2598_s20, %s2594_s19 }
   0xa   : > { %p98_p1 = scmp.eq.s32.totalorder %s97_s26, 0  ;;  %p108_p2 = scmp.eq.s32.totalorder %s2602_s21, 0 }
   0xb   : > { %p113_p3 = scmp.ne.s32.totalorder %s2594_s19, %s2590_s18  ;;  %p114_p4 = scmp.eq.s32.totalorder %s2664_s22, 0 }
   0xc   : > { %s2680_s27 = scalar_select %p98_p1, %s2598_s20, %s100_s25  }
   0xd   : > { %p2682_p5 = por %p108_p2, %p107_p0  ;;  %p2686_p6 = por %p114_p4, %p113_p3 }
   0xe   : > { %p137_p7 = scmp.eq.s32.totalorder %s2664_s22, 1  ;;  %p143_p8 = scmp.eq.s32.totalorder %s2265_s23, 1 }
   0xf   : > { %s4997_s29 = scalar_select %p2686_p6, 1, 0 }
  0x10   : > { %p2432_p10 = scmp.lt.s32.totalorder %s2602_s21, 2  ;;  %p2693_p11 = por %p137_p7, %p107_p0 }
  0x11   : > { %p2697_p12 = por %p143_p8, %p113_p3  ;;  %s201_s7 = sand.u32 1, %s2598_s20  }
  0x12   : > { %s4998_s30 = scalar_select %p2693_p11, 1, 0 }
  0x13   : > { %s4999_s6 = scalar_select %p2697_p12, 1, 0 }
  0x14   : > { %s2348_s8 = sshll.u32 %s2602_s21, 13  ;;  %s2268_s9 = sshll.u32 %s201_s7, 9 }
  0x15   : > { %s2706_s12 = scalar_lea.hbm %s4813_s3, %s2348_s8  ;;  %s205_s13 = scalar_lea.vmem [#allocation2], %s2268_s9 }
  0x16   : > { %s212_s14 = sshll.u32 %s205_s13, 4  ;;  %p2710_p13 = pnand %p2432_p10, %p2682_p5  ;;  %s2714_s14 = int_to_ptr.vmem [resolvable:$true] %s212_s14 }
  0x17   : > { %s2716_s16 = scalar_lea.sflag [#allocation3], %s201_s7  ;;  %s2480_s17 = scalar_lea.hbm %s2706_s12, 8192 }
  0x18   : > { %p2481_p0 = scmp.ne.s32.totalorder %s2706_s12, %s2480_s17  ;;  %p2482_p1 = pneg %p2710_p13 }
  0x19   : > { %s2485_s26 = scalar_lea.hbm %s4813_s3, 16384  ;;  %p2486_p4 = scmp.lt.s32.totalorder %s2706_s12, %s4813_s3 }
  0x1a   : > { %p2483_p2 = pnand %p2482_p1, %p2481_p0  ;;  %p2487_p5 = scmp.lt.s32.totalorder %s2485_s26, %s2480_s17 }
  0x1c   : > { %p2484_p3 = pneg %p2483_p2  ;;  %p2488_p7 = por %p2487_p5, %p2486_p4 }
  0x1e   : > { %p2489_p8 = pnand %p2488_p7, %p2484_p3 }
  0x20   : > { %2492 = shalt.err (!%p2489_p8)
}
  0x21   : > { %s2493_s7 = scalar_lea.vmem %s2714_s14, 8192  ;;  %s2604_s9 = smov [#allocation2]  }
  0x22   : > { %p2494_p10 = scmp.ne.s32.totalorder %s2714_s14, %s2493_s7  ;;  %s2498_s10 = sshll.u32 %s2604_s9, 4  ;;  %s2499_s10 = int_to_ptr.vmem [resolvable:$false] %s2498_s10 }
  0x23   : > { %s2500_s11 = scalar_lea.vmem %s2499_s10, 16384  ;;  %p2501_p2 = scmp.lt.s32.totalorder %s2714_s14, %s2499_s10 }
  0x24   : > { %p2496_p9 = pnand %p2494_p10, %p2482_p1  ;;  %p2502_p12 = scmp.lt.s32.totalorder %s2500_s11, %s2493_s7 }
  0x26   : > { %p2497_p0 = pneg %p2496_p9  ;;  %p2503_p11 = por %p2502_p12, %p2501_p2 }
  0x28   : > { %p2504_p6 = pnand %p2503_p11, %p2497_p0 }
  0x2a   : > { %2507 = shalt.err (!%p2504_p6)
}
  0x2b   : > { %s2605_s13 = smov 128   ;;  %s2606_s17 = smov 8  }
  0x2c   : > { %2424 = dma.hbm_to_vmem [thread:$0]  (!%p2710_p13), %s2706_s12, 8192, %s2714_s14, %s2716_s16, %s2605_s13, %s2605_s13, %s2606_s17  }
  0x2d   : > { %p2271_p9 = scmp.ge.s32.totalorder %s2602_s21, 1  ;;  %p220_p1 = scmp.lt.s32.totalorder %s2602_s21, 3 }
  0x2f   : > { %p221_p3 = pnand %p2271_p9, %p220_p1 }
  0x31   : > { %224 = sbr.rel (%p221_p3) target bundleno = 1036 (0x40c), region = 36 }
  0x36   : > { %s2740_s23 = sand.u32 1, %s2594_s19   ;;  %p5001_p6 = scmp.ne.s32.totalorder %s4997_s29, 0 }
  0x37   : > { %s2272_s25 = sshll.u32 %s2740_s23, 9  ;;  %s227_s26 = scalar_lea.sflag [#allocation3], %s2740_s23 }
  0x38   : > { %s2746_s28 = scalar_lea.vmem [#allocation2], %s2272_s25 }
  0x39   : > { %2577 = dma.done.wait (%p5001_p6), %s227_s26, 8192  }
  0x3a   : > { %2579 = vsyncadd (%p5001_p6), %s227_s26, 4294959104  ;;  %p265_p11 = scmp.lt.s32.totalorder %s2664_s22, 1  ;;  %v268_v0 = vld [vmem:[%s4811_s1] sm:$0xff]  ;;  %vm403_vm0 = vcmask 39936   ;;  %v270_v2 = vld [vmem:[%s4811_s1 + $0x10] sm:$0xff]  ;;  %v2607_v59 = vmov 0  }
  0x3b   : > { %v269_v5 = vld [vmem:[%s4811_s1 + $0x8] sm:$0xff]  ;;  %v271_v6 = vld [vmem:[%s4811_s1 + $0x18] sm:$0xff]  ;;  %v272_v9 = vld [vmem:[%s4811_s1 + $0x20] sm:$0xff]  ;;  %2472 = vset.pattern.permute.xlu0 %v2607_v59  ;;  %2473 = vset.pattern.permute.xlu1 %v2607_v59  ;;  %s2274_s14 = sshll.u32 %s2740_s23, 1  ;;  %s2414_s7 = sshll.u32 %s2664_s22, 5 }
  0x3c   : > { %s266_s12 = scalar_select %p265_p11, %s2664_s22, 1  ;;  %v273_v10 = vld [vmem:[%s4811_s1 + $0x28] sm:$0xff]  ;;  %v274_v17 = vld [vmem:[%s4811_s1 + $0x30] sm:$0xff]  ;;  %v275_v18 = vld [vmem:[%s4811_s1 + $0x38] sm:$0xff] }
  0x3d   : > { %v276_v23 = vld [vmem:[%s4811_s1 + $0x40] sm:$0xff]  ;;  %v277_v24 = vld [vmem:[%s4811_s1 + $0x48] sm:$0xff]  ;;  %v278_v29 = vld [vmem:[%s4811_s1 + $0x50] sm:$0xff]  ;;  %s4742_s9 = scalar_lea.vmem [#allocation6], %s2274_s14  ;;  %s2119_s29 = scalar_lea.sflag [#allocation4], %s2740_s23 }
  0x3e   : > { %s267_s16 = scalar_lea.vmem %s4810_s0, %s266_s12  ;;  %v279_v30 = vld [vmem:[%s4811_s1 + $0x58] sm:$0xff]  ;;  %v280_v35 = vld [vmem:[%s4811_s1 + $0x60] sm:$0xff]  ;;  %v281_v36 = vld [vmem:[%s4811_s1 + $0x68] sm:$0xff]  ;;  %s2154_s10 = sshll.u32 %s4742_s9, 4  ;;  %s2155_s10 = int_to_ptr.vmem [resolvable:$true] %s2154_s10 }
  0x3f   : > { %v2760_v1 = vld [vmem:[%s267_s16] ss:$0 sm:$0xff]  ;;  %v282_v41 = vld [vmem:[%s4811_s1 + $0x70] sm:$0xff]  ;;  %v283_v42 = vld [vmem:[%s4811_s1 + $0x78] sm:$0xff]  ;;  %p5325_p13 = scmp.ne.s32.totalorder %s4998_s30, 0  ;;  %s2609_s13 = smov [#allocation5]  }
  0x40   : > { %v339_v3 = vmul.f32 %v2760_v1, %v268_v0  ;;  %v341_v4 = vmul.f32 %v2760_v1, %v270_v2  ;;  %v340_v7 = vmul.f32 %v2760_v1, %v269_v5  ;;  %v342_v8 = vmul.f32 %v2760_v1, %v271_v6  ;;  %v284_v47 = vld [vmem:[%s4811_s1 + $0x80] sm:$0xff]  ;;  %v285_v48 = vld [vmem:[%s4811_s1 + $0x88] sm:$0xff]  ;;  %v286_v53 = vld [vmem:[%s4811_s1 + $0x90] sm:$0xff]  ;;  %s2512_s17 = sshll.u32 %s2609_s13, 4  ;;  %s2513_s17 = int_to_ptr.vmem [resolvable:$false] %s2512_s17 }
  0x41   : > { %v343_v15 = vmul.f32 %v2760_v1, %v272_v9  ;;  %v344_v16 = vmul.f32 %v2760_v1, %v273_v10  ;;  %v345_v21 = vmul.f32 %v2760_v1, %v274_v17  ;;  %v346_v22 = vmul.f32 %v2760_v1, %v275_v18  ;;  %v287_v54 = vld [vmem:[%s4811_s1 + $0x98] sm:$0xff]  ;;  %v288_v60 = vld [vmem:[%s4811_s1 + $0xa0] sm:$0xff]  ;;  %v289_v61 = vld [vmem:[%s4811_s1 + $0xa8] sm:$0xff]  ;;  %s2514_s26 = scalar_lea.vmem %s2513_s17, 16384 }
  0x42   : > { %v404_v11 = vsel %vm403_vm0, %v339_v3, 0.0  ;;  %v410_v12 = vsel %vm403_vm0, %v341_v4, 0.0  ;;  %v407_v13 = vsel %vm403_vm0, %v340_v7, 0.0  ;;  %v413_v14 = vsel %vm403_vm0, %v342_v8, 0.0  ;;  %v290_v3 = vld [vmem:[%s4811_s1 + $0xb0] sm:$0xff]  ;;  %v291_v4 = vld [vmem:[%s4811_s1 + $0xb8] sm:$0xff] }
  0x43   : > { %405 = vadd.xlane.f32.xlu0 %v404_v11  ;;  %411 = vadd.xlane.f32.xlu1 %v410_v12  ;;  %v416_v19 = vsel %vm403_vm0, %v343_v15, 0.0  ;;  %v419_v20 = vsel %vm403_vm0, %v344_v16, 0.0  ;;  %v422_v25 = vsel %vm403_vm0, %v345_v21, 0.0  ;;  %v425_v26 = vsel %vm403_vm0, %v346_v22, 0.0  ;;  %v292_v9 = vld [vmem:[%s4811_s1 + $0xc0] sm:$0xff]  ;;  %v293_v10 = vld [vmem:[%s4811_s1 + $0xc8] sm:$0xff] }
  0x44   : > { %v347_v27 = vmul.f32 %v2760_v1, %v276_v23  ;;  %v348_v28 = vmul.f32 %v2760_v1, %v277_v24  ;;  %v349_v33 = vmul.f32 %v2760_v1, %v278_v29  ;;  %v350_v34 = vmul.f32 %v2760_v1, %v279_v30  ;;  %v294_v15 = vld [vmem:[%s4811_s1 + $0xd0] sm:$0xff]  ;;  %v295_v16 = vld [vmem:[%s4811_s1 + $0xd8] sm:$0xff]  ;;  %v296_v21 = vld [vmem:[%s4811_s1 + $0xe0] sm:$0xff] }
  0x45   : > { %v351_v39 = vmul.f32 %v2760_v1, %v280_v35  ;;  %v352_v40 = vmul.f32 %v2760_v1, %v281_v36  ;;  %v353_v45 = vmul.f32 %v2760_v1, %v282_v41  ;;  %v354_v46 = vmul.f32 %v2760_v1, %v283_v42  ;;  %v297_v22 = vld [vmem:[%s4811_s1 + $0xe8] sm:$0xff] }
  0x46   : > { %v428_v31 = vsel %vm403_vm0, %v347_v27, 0.0  ;;  %v431_v32 = vsel %vm403_vm0, %v348_v28, 0.0  ;;  %v434_v37 = vsel %vm403_vm0, %v349_v33, 0.0  ;;  %v437_v38 = vsel %vm403_vm0, %v350_v34, 0.0  ;;  %v298_v27 = vld [vmem:[%s4811_s1 + $0xf0] sm:$0xff]  ;;  %v299_v28 = vld [vmem:[%s4811_s1 + $0xf8] sm:$0xff] }
  0x47   : > { %408 = vadd.xlane.f32.xlu0 %v407_v13  ;;  %414 = vadd.xlane.f32.xlu1 %v413_v14  ;;  %v440_v43 = vsel %vm403_vm0, %v351_v39, 0.0  ;;  %v443_v44 = vsel %vm403_vm0, %v352_v40, 0.0  ;;  %v446_v49 = vsel %vm403_vm0, %v353_v45, 0.0  ;;  %v449_v50 = vsel %vm403_vm0, %v354_v46, 0.0  ;;  %v300_v33 = vld [vmem:[%s4811_s1 + $0x100] sm:$0xff]  ;;  %v301_v34 = vld [vmem:[%s4811_s1 + $0x108] sm:$0xff] }
  0x48   : > { %v355_v51 = vmul.f32 %v2760_v1, %v284_v47  ;;  %v356_v52 = vmul.f32 %v2760_v1, %v285_v48  ;;  %v357_v57 = vmul.f32 %v2760_v1, %v286_v53  ;;  %v358_v58 = vmul.f32 %v2760_v1, %v287_v54  ;;  %v302_v39 = vld [vmem:[%s4811_s1 + $0x110] sm:$0xff]  ;;  %v303_v40 = vld [vmem:[%s4811_s1 + $0x118] sm:$0xff]  ;;  %v304_v45 = vld [vmem:[%s4811_s1 + $0x120] sm:$0xff] }
  0x49   : > { %v359_v0 = vmul.f32 %v2760_v1, %v288_v60  ;;  %v360_v2 = vmul.f32 %v2760_v1, %v289_v61  ;;  %v361_v7 = vmul.f32 %v2760_v1, %v290_v3  ;;  %v362_v8 = vmul.f32 %v2760_v1, %v291_v4  ;;  %v305_v46 = vld [vmem:[%s4811_s1 + $0x128] sm:$0xff] }
  0x4a   : > { %v452_v55 = vsel %vm403_vm0, %v355_v51, 0.0  ;;  %v455_v56 = vsel %vm403_vm0, %v356_v52, 0.0  ;;  %v458_v62 = vsel %vm403_vm0, %v357_v57, 0.0  ;;  %v461_v63 = vsel %vm403_vm0, %v358_v58, 0.0  ;;  %v307_v51 = vld [vmem:[%s4811_s1 + $0x138] sm:$0xff]  ;;  %v306_v52 = vld [vmem:[%s4811_s1 + $0x130] sm:$0xff] }
  0x4b   : > { %417 = vadd.xlane.f32.xlu0 %v416_v19  ;;  %420 = vadd.xlane.f32.xlu1 %v419_v20  ;;  %v464_v5 = vsel %vm403_vm0, %v359_v0, 0.0  ;;  %v467_v6 = vsel %vm403_vm0, %v360_v2, 0.0  ;;  %v470_v11 = vsel %vm403_vm0, %v361_v7, 0.0  ;;  %v473_v12 = vsel %vm403_vm0, %v362_v8, 0.0  ;;  %v309_v57 = vld [vmem:[%s4811_s1 + $0x148] sm:$0xff]  ;;  %v308_v58 = vld [vmem:[%s4811_s1 + $0x140] sm:$0xff] }
  0x4c   : > { %v363_v13 = vmul.f32 %v2760_v1, %v292_v9  ;;  %v364_v14 = vmul.f32 %v2760_v1, %v293_v10  ;;  %v365_v19 = vmul.f32 %v2760_v1, %v294_v15  ;;  %v366_v20 = vmul.f32 %v2760_v1, %v295_v16  ;;  %v310_v0 = vld [vmem:[%s4811_s1 + $0x150] sm:$0xff]  ;;  %v312_v7 = vld [vmem:[%s4811_s1 + $0x160] sm:$0xff] }
  0x4d   : > { %v380_v61 = vmul.f32 %v2760_v1, %v309_v57 }
  0x4e   : > { %v476_v17 = vsel %vm403_vm0, %v363_v13, 0.0  ;;  %v479_v18 = vsel %vm403_vm0, %v364_v14, 0.0  ;;  %v482_v23 = vsel %vm403_vm0, %v365_v19, 0.0  ;;  %v485_v24 = vsel %vm403_vm0, %v366_v20, 0.0  ;;  %v314_v13 = vld [vmem:[%s4811_s1 + $0x170] sm:$0xff]  ;;  %v316_v19 = vld [vmem:[%s4811_s1 + $0x180] sm:$0xff] }
  0x4f   : > { %423 = vadd.xlane.f32.xlu0 %v422_v25  ;;  %426 = vadd.xlane.f32.xlu1 %v425_v26  ;;  %v367_v25 = vmul.f32 %v2760_v1, %v296_v21  ;;  %v368_v26 = vmul.f32 %v2760_v1, %v297_v22  ;;  %v527_v2 = vsel %vm403_vm0, %v380_v61, 0.0 }
  0x51   : > { %v488_v29 = vsel %vm403_vm0, %v367_v25, 0.0  ;;  %v491_v30 = vsel %vm403_vm0, %v368_v26, 0.0  ;;  %v318_v25 = vld [vmem:[%s4811_s1 + $0x190] sm:$0xff] }
  0x53   : > { %429 = vadd.xlane.f32.xlu0 %v428_v31  ;;  %432 = vadd.xlane.f32.xlu1 %v431_v32  ;;  %v369_v31 = vmul.f32 %v2760_v1, %v298_v27  ;;  %v370_v32 = vmul.f32 %v2760_v1, %v299_v28 }
  0x55   : > { %v494_v35 = vsel %vm403_vm0, %v369_v31, 0.0  ;;  %v497_v36 = vsel %vm403_vm0, %v370_v32, 0.0  ;;  %v320_v31 = vld [vmem:[%s4811_s1 + $0x1a0] sm:$0xff] }
  0x57   : > { %435 = vadd.xlane.f32.xlu0 %v434_v37  ;;  %438 = vadd.xlane.f32.xlu1 %v437_v38  ;;  %v371_v37 = vmul.f32 %v2760_v1, %v300_v33  ;;  %v372_v38 = vmul.f32 %v2760_v1, %v301_v34 }
  0x59   : > { %v500_v41 = vsel %vm403_vm0, %v371_v37, 0.0  ;;  %v503_v42 = vsel %vm403_vm0, %v372_v38, 0.0  ;;  %v322_v37 = vld [vmem:[%s4811_s1 + $0x1b0] sm:$0xff] }
  0x5b   : > { %441 = vadd.xlane.f32.xlu0 %v440_v43  ;;  %444 = vadd.xlane.f32.xlu1 %v443_v44  ;;  %v373_v43 = vmul.f32 %v2760_v1, %v302_v39  ;;  %v374_v44 = vmul.f32 %v2760_v1, %v303_v40 }
  0x5d   : > { %v506_v47 = vsel %vm403_vm0, %v373_v43, 0.0  ;;  %v509_v48 = vsel %vm403_vm0, %v374_v44, 0.0  ;;  %v324_v43 = vld [vmem:[%s4811_s1 + $0x1c0] sm:$0xff] }
  0x5f   : > { %447 = vadd.xlane.f32.xlu0 %v446_v49  ;;  %450 = vadd.xlane.f32.xlu1 %v449_v50  ;;  %v375_v49 = vmul.f32 %v2760_v1, %v304_v45  ;;  %v376_v50 = vmul.f32 %v2760_v1, %v305_v46 }
  0x61   : > { %v512_v53 = vsel %vm403_vm0, %v375_v49, 0.0  ;;  %v515_v54 = vsel %vm403_vm0, %v376_v50, 0.0  ;;  %v326_v49 = vld [vmem:[%s4811_s1 + $0x1d0] sm:$0xff] }
  0x63   : > { %453 = vadd.xlane.f32.xlu0 %v452_v55  ;;  %456 = vadd.xlane.f32.xlu1 %v455_v56  ;;  %v378_v55 = vmul.f32 %v2760_v1, %v307_v51  ;;  %v377_v56 = vmul.f32 %v2760_v1, %v306_v52 }
  0x65   : > { %v521_v59 = vsel %vm403_vm0, %v378_v55, 0.0  ;;  %v518_v60 = vsel %vm403_vm0, %v377_v56, 0.0  ;;  %v328_v55 = vld [vmem:[%s4811_s1 + $0x1e0] sm:$0xff] }
  0x67   : > { %459 = vadd.xlane.f32.xlu0 %v458_v62  ;;  %462 = vadd.xlane.f32.xlu1 %v461_v63  ;;  %v379_v62 = vmul.f32 %v2760_v1, %v308_v58  ;;  %v311_v63 = vld [vmem:[%s4811_s1 + $0x158] sm:$0xff] }
  0x68   : > { %v382_v4 = vmul.f32 %v2760_v1, %v311_v63 }
  0x69   : > { %v524_v3 = vsel %vm403_vm0, %v379_v62, 0.0 }
  0x6a   : > { %v533_v8 = vsel %vm403_vm0, %v382_v4, 0.0 }
  0x6b   : > { %465 = vadd.xlane.f32.xlu0 %v464_v5  ;;  %468 = vadd.xlane.f32.xlu1 %v467_v6  ;;  %v381_v5 = vmul.f32 %v2760_v1, %v310_v0  ;;  %v313_v6 = vld [vmem:[%s4811_s1 + $0x168] sm:$0xff] }
  0x6c   : > { %v384_v10 = vmul.f32 %v2760_v1, %v313_v6  ;;  %v597_v6 = vld [vmem:[%s4812_s2 + $0x8] sm:$0xff] }
  0x6d   : > { %v530_v9 = vsel %vm403_vm0, %v381_v5, 0.0  ;;  %v598_v5 = vld [vmem:[%s4812_s2 + $0x10] sm:$0xff] }
  0x6e   : > { %v539_v14 = vsel %vm403_vm0, %v384_v10, 0.0 }
  0x6f   : > { %471 = vadd.xlane.f32.xlu0 %v470_v11  ;;  %474 = vadd.xlane.f32.xlu1 %v473_v12  ;;  %v383_v11 = vmul.f32 %v2760_v1, %v312_v7  ;;  %v315_v12 = vld [vmem:[%s4811_s1 + $0x178] sm:$0xff] }
  0x70   : > { %v386_v16 = vmul.f32 %v2760_v1, %v315_v12 }
  0x71   : > { %v536_v15 = vsel %vm403_vm0, %v383_v11, 0.0 }
  0x72   : > { %v545_v20 = vsel %vm403_vm0, %v386_v16, 0.0  ;;  %v601_v16 = vld [vmem:[%s4812_s2 + $0x28] sm:$0xff] }
  0x73   : > { %477 = vadd.xlane.f32.xlu0 %v476_v17  ;;  %480 = vadd.xlane.f32.xlu1 %v479_v18  ;;  %v385_v17 = vmul.f32 %v2760_v1, %v314_v13  ;;  %v317_v18 = vld [vmem:[%s4811_s1 + $0x188] sm:$0xff] }
  0x74   : > { %v388_v22 = vmul.f32 %v2760_v1, %v317_v18 }
  0x75   : > { %v542_v21 = vsel %vm403_vm0, %v385_v17, 0.0 }
  0x76   : > { %v551_v26 = vsel %vm403_vm0, %v388_v22, 0.0  ;;  %v603_v22 = vld [vmem:[%s4812_s2 + $0x38] sm:$0xff] }
  0x77   : > { %483 = vadd.xlane.f32.xlu0 %v482_v23  ;;  %486 = vadd.xlane.f32.xlu1 %v485_v24  ;;  %v387_v23 = vmul.f32 %v2760_v1, %v316_v19  ;;  %v319_v24 = vld [vmem:[%s4811_s1 + $0x198] sm:$0xff] }
  0x78   : > { %v390_v28 = vmul.f32 %v2760_v1, %v319_v24 }
  0x79   : > { %v548_v27 = vsel %vm403_vm0, %v387_v23, 0.0 }
  0x7a   : > { %v557_v32 = vsel %vm403_vm0, %v390_v28, 0.0  ;;  %v605_v28 = vld [vmem:[%s4812_s2 + $0x48] sm:$0xff] }
  0x7b   : > { %489 = vadd.xlane.f32.xlu0 %v488_v29  ;;  %492 = vadd.xlane.f32.xlu1 %v491_v30  ;;  %v389_v29 = vmul.f32 %v2760_v1, %v318_v25  ;;  %v321_v30 = vld [vmem:[%s4811_s1 + $0x1a8] sm:$0xff] }
  0x7c   : > { %v392_v34 = vmul.f32 %v2760_v1, %v321_v30 }
  0x7d   : > { %v554_v33 = vsel %vm403_vm0, %v389_v29, 0.0 }
  0x7e   : > { %v563_v38 = vsel %vm403_vm0, %v392_v34, 0.0  ;;  %v607_v34 = vld [vmem:[%s4812_s2 + $0x58] sm:$0xff] }
  0x7f   : > { %495 = vadd.xlane.f32.xlu0 %v494_v35  ;;  %498 = vadd.xlane.f32.xlu1 %v497_v36  ;;  %v391_v35 = vmul.f32 %v2760_v1, %v320_v31  ;;  %v323_v36 = vld [vmem:[%s4811_s1 + $0x1b8] sm:$0xff] }
  0x80   : > { %v394_v40 = vmul.f32 %v2760_v1, %v323_v36 }
  0x81   : > { %v560_v39 = vsel %vm403_vm0, %v391_v35, 0.0 }
  0x82   : > { %v569_v44 = vsel %vm403_vm0, %v394_v40, 0.0  ;;  %v609_v40 = vld [vmem:[%s4812_s2 + $0x68] sm:$0xff] }
  0x83   : > { %501 = vadd.xlane.f32.xlu0 %v500_v41  ;;  %504 = vadd.xlane.f32.xlu1 %v503_v42  ;;  %v393_v41 = vmul.f32 %v2760_v1, %v322_v37  ;;  %v325_v42 = vld [vmem:[%s4811_s1 + $0x1c8] sm:$0xff] }
  0x84   : > { %v396_v46 = vmul.f32 %v2760_v1, %v325_v42 }
  0x85   : > { %v566_v45 = vsel %vm403_vm0, %v393_v41, 0.0 }
  0x86   : > { %v575_v50 = vsel %vm403_vm0, %v396_v46, 0.0  ;;  %v611_v46 = vld [vmem:[%s4812_s2 + $0x78] sm:$0xff] }
  0x87   : > { %507 = vadd.xlane.f32.xlu0 %v506_v47  ;;  %510 = vadd.xlane.f32.xlu1 %v509_v48  ;;  %v395_v47 = vmul.f32 %v2760_v1, %v324_v43  ;;  %v327_v48 = vld [vmem:[%s4811_s1 + $0x1d8] sm:$0xff] }
  0x88   : > { %v398_v52 = vmul.f32 %v2760_v1, %v327_v48 }
  0x89   : > { %v572_v51 = vsel %vm403_vm0, %v395_v47, 0.0 }
  0x8a   : > { %v581_v56 = vsel %vm403_vm0, %v398_v52, 0.0  ;;  %v613_v52 = vld [vmem:[%s4812_s2 + $0x88] sm:$0xff] }
  0x8b   : > { %513 = vadd.xlane.f32.xlu0 %v512_v53  ;;  %516 = vadd.xlane.f32.xlu1 %v515_v54  ;;  %v397_v53 = vmul.f32 %v2760_v1, %v326_v49  ;;  %v329_v54 = vld [vmem:[%s4811_s1 + $0x1e8] sm:$0xff] }
  0x8c   : > { %v400_v58 = vmul.f32 %v2760_v1, %v329_v54 }
  0x8d   : > { %v578_v57 = vsel %vm403_vm0, %v397_v53, 0.0 }
  0x8e   : > { %v587_v61 = vsel %vm403_vm0, %v400_v58, 0.0  ;;  %v615_v58 = vld [vmem:[%s4812_s2 + $0x98] sm:$0xff] }
  0x8f   : > { %522 = vadd.xlane.f32.xlu0 %v521_v59  ;;  %519 = vadd.xlane.f32.xlu1 %v518_v60  ;;  %v399_v59 = vmul.f32 %v2760_v1, %v328_v55  ;;  %v330_v60 = vld [vmem:[%s4811_s1 + $0x1f0] sm:$0xff] }
  0x90   : > { %v401_v63 = vmul.f32 %v2760_v1, %v330_v60 }
  0x91   : > { %v584_v62 = vsel %vm403_vm0, %v399_v59, 0.0 }
  0x92   : > { %v590_v0 = vsel %vm403_vm0, %v401_v63, 0.0 }
  0x93   : > { %528 = vadd.xlane.f32.xlu0 %v527_v2  ;;  %525 = vadd.xlane.f32.xlu1 %v524_v3  ;;  %v596_v2 = vld [vmem:[%s4812_s2] sm:$0xff] }
  0x97   : > { %534 = vadd.xlane.f32.xlu0 %v533_v8  ;;  %531 = vadd.xlane.f32.xlu1 %v530_v9  ;;  %v599_v9 = vld [vmem:[%s4812_s2 + $0x18] sm:$0xff] }
  0x9b   : > { %540 = vadd.xlane.f32.xlu0 %v539_v14  ;;  %537 = vadd.xlane.f32.xlu1 %v536_v15  ;;  %v600_v14 = vld [vmem:[%s4812_s2 + $0x20] sm:$0xff] }
  0x9f   : > { %546 = vadd.xlane.f32.xlu0 %v545_v20  ;;  %543 = vadd.xlane.f32.xlu1 %v542_v21  ;;  %v602_v20 = vld [vmem:[%s4812_s2 + $0x30] sm:$0xff] }
  0xa3   : > { %552 = vadd.xlane.f32.xlu0 %v551_v26  ;;  %549 = vadd.xlane.f32.xlu1 %v548_v27  ;;  %v604_v26 = vld [vmem:[%s4812_s2 + $0x40] sm:$0xff] }
  0xa7   : > { %558 = vadd.xlane.f32.xlu0 %v557_v32  ;;  %555 = vadd.xlane.f32.xlu1 %v554_v33  ;;  %v606_v32 = vld [vmem:[%s4812_s2 + $0x50] sm:$0xff] }
  0xab   : > { %564 = vadd.xlane.f32.xlu0 %v563_v38  ;;  %561 = vadd.xlane.f32.xlu1 %v560_v39  ;;  %v608_v38 = vld [vmem:[%s4812_s2 + $0x60] sm:$0xff] }
  0xaf   : > { %570 = vadd.xlane.f32.xlu0 %v569_v44  ;;  %567 = vadd.xlane.f32.xlu1 %v566_v45  ;;  %v610_v44 = vld [vmem:[%s4812_s2 + $0x70] sm:$0xff] }
  0xb3   : > { %576 = vadd.xlane.f32.xlu0 %v575_v50  ;;  %573 = vadd.xlane.f32.xlu1 %v572_v51  ;;  %v612_v50 = vld [vmem:[%s4812_s2 + $0x80] sm:$0xff] }
  0xb7   : > { %582 = vadd.xlane.f32.xlu0 %v581_v56  ;;  %579 = vadd.xlane.f32.xlu1 %v578_v57  ;;  %v614_v56 = vld [vmem:[%s4812_s2 + $0x90] sm:$0xff] }
  0xbb   : > { %588 = vadd.xlane.f32.xlu0 %v587_v61  ;;  %585 = vadd.xlane.f32.xlu1 %v584_v62  ;;  %v616_v62 = vld [vmem:[%s4812_s2 + $0xa0] sm:$0xff] }
  0xbf   : > { %591 = vadd.xlane.f32.xlu1 %v590_v0  ;;  %v617_v0 = vld [vmem:[%s4812_s2 + $0xa8] sm:$0xff] }
  0xcc   : > { %v406_v3 = vpop.xlane.xlu0 %405  ;;  %v412_v4 = vpop.xlane.xlu1 %411 }
  0xcd   : > { %v660_v7 = vadd.f32 %v596_v2, %v406_v3  ;;  %v662_v11 = vadd.f32 %v598_v5, %v412_v4  ;;  %v618_v5 = vld [vmem:[%s4812_s2 + $0xb0] sm:$0xff] }
  0xd0   : > { %v409_v8 = vpop.xlane.xlu0 %408  ;;  %v415_v10 = vpop.xlane.xlu1 %414 }
  0xd1   : > { %v661_v12 = vadd.f32 %v597_v6, %v409_v8  ;;  %918 = vperm.xlu0 %2472, %v660_v7   ;;  %v663_v13 = vadd.f32 %v599_v9, %v415_v10  ;;  %v619_v7 = vld [vmem:[%s4812_s2 + $0xb8] sm:$0xff] }
  0xd3   : > { %923 = vperm.xlu1 %2473, %v661_v12  }
  0xd4   : > { %v418_v15 = vpop.xlane.xlu0 %417  ;;  %v421_v17 = vpop.xlane.xlu1 %420 }
  0xd5   : > { %928 = vperm.xlu0 %2472, %v662_v11   ;;  %v664_v18 = vadd.f32 %v600_v14, %v418_v15  ;;  %v665_v19 = vadd.f32 %v601_v16, %v421_v17  ;;  %v620_v11 = vld [vmem:[%s4812_s2 + $0xc0] sm:$0xff]  ;;  %v622_v17 = vld [vmem:[%s4812_s2 + $0xd0] sm:$0xff] }
  0xd7   : > { %933 = vperm.xlu1 %2473, %v663_v13   ;;  %v621_v13 = vld [vmem:[%s4812_s2 + $0xc8] sm:$0xff] }
  0xd8   : > { %v424_v21 = vpop.xlane.xlu0 %423  ;;  %v427_v23 = vpop.xlane.xlu1 %426 }
  0xd9   : > { %938 = vperm.xlu0 %2472, %v664_v18   ;;  %v666_v24 = vadd.f32 %v602_v20, %v424_v21  ;;  %v667_v25 = vadd.f32 %v603_v22, %v427_v23 }
  0xdb   : > { %943 = vperm.xlu1 %2473, %v665_v19   ;;  %v623_v19 = vld [vmem:[%s4812_s2 + $0xd8] sm:$0xff] }
  0xdc   : > { %v430_v27 = vpop.xlane.xlu0 %429  ;;  %v433_v29 = vpop.xlane.xlu1 %432 }
  0xdd   : > { %948 = vperm.xlu0 %2472, %v666_v24   ;;  %v668_v30 = vadd.f32 %v604_v26, %v430_v27  ;;  %v669_v31 = vadd.f32 %v605_v28, %v433_v29  ;;  %v625_v26 = vld [vmem:[%s4812_s2 + $0xe8] sm:$0xff] }
  0xdf   : > { %953 = vperm.xlu1 %2473, %v667_v25   ;;  %v624_v25 = vld [vmem:[%s4812_s2 + $0xe0] sm:$0xff] }
  0xe0   : > { %v436_v33 = vpop.xlane.xlu0 %435  ;;  %v439_v35 = vpop.xlane.xlu1 %438 }
  0xe1   : > { %958 = vperm.xlu0 %2472, %v668_v30   ;;  %v670_v36 = vadd.f32 %v606_v32, %v436_v33  ;;  %v671_v37 = vadd.f32 %v607_v34, %v439_v35  ;;  %v626_v33 = vld [vmem:[%s4812_s2 + $0xf0] sm:$0xff] }
  0xe3   : > { %963 = vperm.xlu1 %2473, %v669_v31  }
  0xe4   : > { %v442_v39 = vpop.xlane.xlu0 %441  ;;  %v445_v41 = vpop.xlane.xlu1 %444 }
  0xe5   : > { %968 = vperm.xlu0 %2472, %v670_v36   ;;  %v672_v42 = vadd.f32 %v608_v38, %v442_v39  ;;  %v673_v43 = vadd.f32 %v609_v40, %v445_v41  ;;  %v629_v38 = vld [vmem:[%s4812_s2 + $0x108] sm:$0xff] }
  0xe7   : > { %973 = vperm.xlu1 %2473, %v671_v37   ;;  %v628_v37 = vld [vmem:[%s4812_s2 + $0x100] sm:$0xff] }
  0xe8   : > { %v448_v45 = vpop.xlane.xlu0 %447  ;;  %v451_v47 = vpop.xlane.xlu1 %450 }
  0xe9   : > { %978 = vperm.xlu0 %2472, %v672_v42   ;;  %v674_v48 = vadd.f32 %v610_v44, %v448_v45  ;;  %v675_v49 = vadd.f32 %v611_v46, %v451_v47  ;;  %v630_v45 = vld [vmem:[%s4812_s2 + $0x110] sm:$0xff]  ;;  %v331_v46 = vld [vmem:[%s4811_s1 + $0x1f8] sm:$0xff] }
  0xea   : > { %v631_v47 = vld [vmem:[%s4812_s2 + $0x118] sm:$0xff] }
  0xeb   : > { %983 = vperm.xlu1 %2473, %v673_v43  }
  0xec   : > { %v454_v51 = vpop.xlane.xlu0 %453  ;;  %v457_v53 = vpop.xlane.xlu1 %456 }
  0xed   : > { %988 = vperm.xlu0 %2472, %v674_v48   ;;  %v676_v54 = vadd.f32 %v612_v50, %v454_v51  ;;  %v677_v55 = vadd.f32 %v613_v52, %v457_v53  ;;  %v402_v51 = vmul.f32 %v2760_v1, %v331_v46  ;;  %v3267_v46 = vld [vmem:[%s2746_s28 + $0x10] sm:$0xff] }
  0xef   : > { %993 = vperm.xlu1 %2473, %v675_v49  }
  0xf0   : > { %v460_v57 = vpop.xlane.xlu0 %459  ;;  %v463_v59 = vpop.xlane.xlu1 %462 }
  0xf1   : > { %998 = vperm.xlu0 %2472, %v676_v54   ;;  %v678_v60 = vadd.f32 %v614_v56, %v460_v57  ;;  %v679_v61 = vadd.f32 %v615_v58, %v463_v59  ;;  %v632_v56 = vld [vmem:[%s4812_s2 + $0x120] sm:$0xff]  ;;  %v634_v57 = vld [vmem:[%s4812_s2 + $0x130] sm:$0xff] }
  0xf3   : > { %1003 = vperm.xlu1 %2473, %v677_v55   ;;  %v593_v55 = vsel %vm403_vm0, %v402_v51, 0.0 }
  0xf4   : > { %v466_v63 = vpop.xlane.xlu0 %465  ;;  %v469_v2 = vpop.xlane.xlu1 %468 }
  0xf5   : > { %1008 = vperm.xlu0 %2472, %v678_v60   ;;  %v680_v3 = vadd.f32 %v616_v62, %v466_v63  ;;  %v681_v4 = vadd.f32 %v617_v0, %v469_v2  ;;  %v638_v2 = vld [vmem:[%s4812_s2 + $0x150] sm:$0xff] }
  0xf7   : > { %1013 = vperm.xlu1 %2473, %v679_v61   ;;  %v636_v61 = vld [vmem:[%s4812_s2 + $0x140] sm:$0xff] }
  0xf8   : > { %v472_v6 = vpop.xlane.xlu0 %471  ;;  %v475_v8 = vpop.xlane.xlu1 %474 }
  0xf9   : > { %1018 = vperm.xlu0 %2472, %v680_v3   ;;  %v682_v9 = vadd.f32 %v618_v5, %v472_v6  ;;  %v683_v10 = vadd.f32 %v619_v7, %v475_v8  ;;  %v640_v6 = vld [vmem:[%s4812_s2 + $0x160] sm:$0xff] }
  0xfb   : > { %1023 = vperm.xlu1 %2473, %v681_v4  }
  0xfc   : > { %v478_v12 = vpop.xlane.xlu0 %477  ;;  %v481_v14 = vpop.xlane.xlu1 %480 }
  0xfd   : > { %1028 = vperm.xlu0 %2472, %v682_v9   ;;  %v684_v15 = vadd.f32 %v620_v11, %v478_v12  ;;  %v685_v16 = vadd.f32 %v621_v13, %v481_v14  ;;  %v627_v9 = vld [vmem:[%s4812_s2 + $0xf8] sm:$0xff]  ;;  %v642_v11 = vld [vmem:[%s4812_s2 + $0x170] sm:$0xff] }
  0xff   : > { %1033 = vperm.xlu1 %2473, %v683_v10  }
 0x100   : > { %v484_v18 = vpop.xlane.xlu0 %483  ;;  %v487_v20 = vpop.xlane.xlu1 %486 }
 0x101   : > { %1038 = vperm.xlu0 %2472, %v684_v15   ;;  %v686_v21 = vadd.f32 %v622_v17, %v484_v18  ;;  %v687_v22 = vadd.f32 %v623_v19, %v487_v20  ;;  %v633_v15 = vld [vmem:[%s4812_s2 + $0x128] sm:$0xff]  ;;  %v644_v17 = vld [vmem:[%s4812_s2 + $0x180] sm:$0xff] }
 0x103   : > { %1043 = vperm.xlu1 %2473, %v685_v16  }
 0x104   : > { %v490_v23 = vpop.xlane.xlu0 %489  ;;  %v493_v24 = vpop.xlane.xlu1 %492 }
 0x105   : > { %1048 = vperm.xlu0 %2472, %v686_v21   ;;  %v688_v29 = vadd.f32 %v624_v25, %v490_v23  ;;  %v689_v30 = vadd.f32 %v625_v26, %v493_v24  ;;  %v635_v25 = vld [vmem:[%s4812_s2 + $0x138] sm:$0xff] }
 0x107   : > { %1053 = vperm.xlu1 %2473, %v687_v22   ;;  %v646_v22 = vld [vmem:[%s4812_s2 + $0x190] sm:$0xff] }
 0x108   : > { %v496_v27 = vpop.xlane.xlu0 %495  ;;  %v499_v28 = vpop.xlane.xlu1 %498 }
 0x109   : > { %v690_v36 = vadd.f32 %v626_v33, %v496_v27  ;;  %v691_v14 = vadd.f32 %v627_v9, %v499_v28  ;;  %v648_v28 = vld [vmem:[%s4812_s2 + $0x1a0] sm:$0xff] }
 0x10b   : > { %1058 = vperm.xlu1 %2473, %v688_v29  }
 0x10c   : > { %v502_v31 = vpop.xlane.xlu0 %501  ;;  %v505_v32 = vpop.xlane.xlu1 %504 }
 0x10d   : > { %v692_v41 = vadd.f32 %v628_v37, %v502_v31  ;;  %v693_v42 = vadd.f32 %v629_v38, %v505_v32  ;;  %v3251_v38 = vld [vmem:[%s2746_s28] sm:$0xff] }
 0x10f   : > { %1063 = vperm.xlu1 %2473, %v689_v30   ;;  %v637_v30 = vld [vmem:[%s4812_s2 + $0x148] sm:$0xff] }
 0x110   : > { %v508_v34 = vpop.xlane.xlu0 %507  ;;  %v511_v35 = vpop.xlane.xlu1 %510 }
 0x111   : > { %v694_v50 = vadd.f32 %v630_v45, %v508_v34  ;;  %v695_v52 = vadd.f32 %v631_v47, %v511_v35  ;;  %v650_v34 = vld [vmem:[%s4812_s2 + $0x1b0] sm:$0xff]  ;;  %v4905_v45 = vunpack.c.l.bf16 %v3251_v38 }
 0x113   : > { %1068 = vperm.xlu1 %2473, %v690_v36   ;;  %v639_v36 = vld [vmem:[%s4812_s2 + $0x158] sm:$0xff] }
 0x114   : > { %v514_v39 = vpop.xlane.xlu0 %513  ;;  %v517_v40 = vpop.xlane.xlu1 %516 }
 0x115   : > { %v696_v59 = vadd.f32 %v632_v56, %v514_v39  ;;  %v697_v20 = vadd.f32 %v633_v15, %v517_v40  ;;  %v652_v40 = vld [vmem:[%s4812_s2 + $0x1c0] sm:$0xff]  ;;  %v4878_v56 = vunpack.c.l.bf16 %v3267_v46 }
 0x117   : > { %1078 = vperm.xlu1 %2473, %v692_v41  }
 0x118   : > { %v523_v43 = vpop.xlane.xlu0 %522  ;;  %v520_v44 = vpop.xlane.xlu1 %519 }
 0x119   : > { %v698_v60 = vadd.f32 %v634_v57, %v520_v44  ;;  %v699_v27 = vadd.f32 %v635_v25, %v523_v43  ;;  %v3260_v43 = vld [vmem:[%s2746_s28 + $0x8] sm:$0xff]  ;;  %v4876_v57 = vunpack.c.h.bf16 %v3267_v46 }
 0x11a   : > { %v641_v44 = vld [vmem:[%s4812_s2 + $0x168] sm:$0xff]  ;;  %v4898_v51 = vunpack.c.h.bf16 %v3260_v43 }
 0x11b   : > { %1083 = vperm.xlu1 %2473, %v693_v42  }
 0x11c   : > { %v3182_v48 = vpop.xlane.xlu0 %528  ;;  %v526_v49 = vpop.xlane.xlu1 %525 }
 0x11d   : > { %v700_v0 = vadd.f32 %v636_v61, %v526_v49  ;;  %v701_v33 = vadd.f32 %v637_v30, %v3182_v48  ;;  %v654_v48 = vld [vmem:[%s4812_s2 + $0x1d0] sm:$0xff]  ;;  %v4904_v49 = vunpack.c.h.bf16 %v3251_v38 }
 0x11f   : > { %1088 = vperm.xlu1 %2473, %v694_v50   ;;  %v4899_v50 = vunpack.c.l.bf16 %v3260_v43 }
 0x120   : > { %v3185_v53 = vpop.xlane.xlu0 %534  ;;  %v532_v54 = vpop.xlane.xlu1 %531 }
 0x121   : > { %v702_v5 = vadd.f32 %v638_v2, %v532_v54  ;;  %v703_v39 = vadd.f32 %v639_v36, %v3185_v53 }
 0x123   : > { %1093 = vperm.xlu1 %2473, %v695_v52   ;;  %v3276_v52 = vld [vmem:[%s2746_s28 + $0x18] sm:$0xff] }
 0x124   : > { %594 = vadd.xlane.f32.xlu0 %v593_v55  ;;  %v3194_v58 = vpop.xlane.xlu0 %540  ;;  %v538_v1 = vpop.xlane.xlu1 %537  ;;  %v643_v55 = vld [vmem:[%s4812_s2 + $0x178] sm:$0xff]  ;;  %v4873_v61 = vunpack.c.l.bf16 %v3276_v52 }
 0x125   : > { %v704_v10 = vadd.f32 %v640_v6, %v538_v1  ;;  %v705_v53 = vadd.f32 %v641_v44, %v3194_v58  ;;  %v3285_v1 = vld [vmem:[%s2746_s28 + $0x20] sm:$0xff]  ;;  %v3301_v6 = vld [vmem:[%s2746_s28 + $0x28] sm:$0xff] }
 0x126   : > { %v656_v58 = vld [vmem:[%s4812_s2 + $0x1e0] sm:$0xff] }
 0x127   : > { %1098 = vperm.xlu1 %2473, %v696_v59  }
 0x128   : > { %v3199_v62 = vpop.xlane.xlu0 %546  ;;  %v544_v63 = vpop.xlane.xlu1 %543 }
 0x129   : > { %v706_v16 = vadd.f32 %v642_v11, %v544_v63  ;;  %v4868_v63 = vunpack.c.h.bf16 %v3276_v52  ;;  %v4862_v11 = vunpack.c.h.bf16 %v3285_v1 }
 0x12b   : > { %1108 = vperm.xlu1 %2473, %v698_v60  }
 0x12c   : > { %v3204_v3 = vpop.xlane.xlu0 %552  ;;  %v550_v4 = vpop.xlane.xlu1 %549 }
 0x12d   : > { %v708_v21 = vadd.f32 %v644_v17, %v550_v4 }
 0x12f   : > { %1118 = vperm.xlu1 %2473, %v700_v0  }
 0x130   : > { %v3209_v7 = vpop.xlane.xlu0 %558  ;;  %v556_v8 = vpop.xlane.xlu1 %555 }
 0x131   : > { %v710_v26 = vadd.f32 %v646_v22, %v556_v8  ;;  %v707_v8 = vadd.f32 %v643_v55, %v3199_v62  ;;  %v4860_v22 = vunpack.c.h.bf16 %v3301_v6 }
 0x133   : > { %1128 = vperm.xlu1 %2473, %v702_v5  }
 0x134   : > { %v3217_v12 = vpop.xlane.xlu0 %564  ;;  %v562_v13 = vpop.xlane.xlu1 %561 }
 0x135   : > { %v712_v32 = vadd.f32 %v648_v28, %v562_v13  ;;  %v645_v13 = vld [vmem:[%s4812_s2 + $0x188] sm:$0xff] }
 0x137   : > { %1138 = vperm.xlu1 %2473, %v704_v10   ;;  %v4864_v10 = vunpack.c.l.bf16 %v3285_v1 }
 0x138   : > { %v3225_v18 = vpop.xlane.xlu0 %570  ;;  %v568_v19 = vpop.xlane.xlu1 %567 }
 0x139   : > { %v714_v37 = vadd.f32 %v650_v34, %v568_v19  ;;  %v3314_v19 = vld [vmem:[%s2746_s28 + $0x30] sm:$0xff]  ;;  %v647_v34 = vld [vmem:[%s4812_s2 + $0x198] sm:$0xff] }
 0x13a   : > { %1073 = vperm.xlu0 %2472, %v691_v14   ;;  %v711_v55 = vadd.f32 %v647_v34, %v3209_v7 }
 0x13b   : > { %1148 = vperm.xlu1 %2473, %v706_v16  }
 0x13c   : > { %v3230_v23 = vpop.xlane.xlu0 %576  ;;  %v574_v24 = vpop.xlane.xlu1 %573 }
 0x13d   : > { %v716_v47 = vadd.f32 %v652_v40, %v574_v24  ;;  %v658_v24 = vld [vmem:[%s4812_s2 + $0x1f0] sm:$0xff]  ;;  %v3336_v40 = vld [vmem:[%s2746_s28 + $0x38] sm:$0xff] }
 0x13e   : > { %1103 = vperm.xlu0 %2472, %v697_v20  }
 0x13f   : > { %1158 = vperm.xlu1 %2473, %v708_v21   ;;  %v4861_v21 = vunpack.c.l.bf16 %v3301_v6 }
 0x140   : > { %v580_v29 = vpop.xlane.xlu1 %579  ;;  %v3241_v31 = vpop.xlane.xlu0 %582 }
 0x141   : > { %v718_v59 = vadd.f32 %v654_v48, %v580_v29  ;;  %v709_v29 = vadd.f32 %v645_v13, %v3204_v3 }
 0x142   : > { %1113 = vperm.xlu0 %2472, %v699_v27  }
 0x143   : > { %1168 = vperm.xlu1 %2473, %v710_v26  }
 0x144   : > { %v586_v35 = vpop.xlane.xlu1 %585  ;;  %v3257_v41 = vpop.xlane.xlu0 %588 }
 0x145   : > { %v720_v62 = vadd.f32 %v656_v58, %v586_v35  ;;  %v4850_v58 = vunpack.c.h.bf16 %v3336_v40 }
 0x146   : > { %1123 = vperm.xlu0 %2472, %v701_v33   ;;  %v4854_v33 = vunpack.c.h.bf16 %v3314_v19 }
 0x147   : > { %1178 = vperm.xlu1 %2473, %v712_v32   ;;  %v4857_v32 = vunpack.c.l.bf16 %v3314_v19 }
 0x148   : > { %v592_v42 = vpop.xlane.xlu1 %591 }
 0x149   : > { %v722_v3 = vadd.f32 %v658_v24, %v592_v42  ;;  %v4853_v42 = vunpack.c.l.bf16 %v3336_v40  ;;  %v3366_v24 = vld [vmem:[%s2746_s28 + $0x48] sm:$0xff] }
 0x14a   : > { %1133 = vperm.xlu0 %2472, %v703_v39  }
 0x14b   : > { %1188 = vperm.xlu1 %2473, %v714_v37  }
 0x14c   : > { %v919_v54 = vpop.permute.xlu0 %918 }
 0x14d   : > { %v1236_v0 = vmul.f32 %v919_v54, %v4905_v45  ;;  %v1237_v2 = vmul.f32 %v919_v54, %v4904_v49 }
 0x14e   : > { %v924_v60 = vpop.permute.xlu1 %923  ;;  %1143 = vperm.xlu0 %2472, %v705_v53  }
 0x14f   : > { %v1238_v4 = vmul.f32 %v924_v60, %v4899_v50  ;;  %v1239_v5 = vmul.f32 %v924_v60, %v4898_v51  ;;  %1198 = vperm.xlu1 %2473, %v716_v47  }
 0x150   : > { %v929_v9 = vpop.permute.xlu0 %928 }
 0x151   : > { %v1364_v14 = vadd.f32 %v1238_v4, %v1236_v0  ;;  %v1433_v15 = vadd.f32 %v1239_v5, %v1237_v2  ;;  %v1240_v16 = vmul.f32 %v929_v9, %v4878_v56  ;;  %v1241_v17 = vmul.f32 %v929_v9, %v4876_v57  ;;  %v3349_v0 = vld [vmem:[%s2746_s28 + $0x40] sm:$0xff] }
 0x152   : > { %v934_v20 = vpop.permute.xlu1 %933  ;;  %1153 = vperm.xlu0 %2472, %v707_v8   ;;  %v4847_v13 = vunpack.c.l.bf16 %v3349_v0  ;;  %v3625_v57 = vld [vmem:[%s2746_s28 + $0x120] sm:$0xff] }
 0x153   : > { %v1365_v25 = vadd.f32 %v1364_v14, %v1240_v16  ;;  %v1434_v26 = vadd.f32 %v1433_v15, %v1241_v17  ;;  %v1242_v27 = vmul.f32 %v934_v20, %v4873_v61  ;;  %v1243_v28 = vmul.f32 %v934_v20, %v4868_v63  ;;  %1208 = vperm.xlu1 %2473, %v718_v59   ;;  %v649_v59 = vld [vmem:[%s4812_s2 + $0x1a8] sm:$0xff]  ;;  %v651_v15 = vld [vmem:[%s4812_s2 + $0x1b8] sm:$0xff] }
 0x154   : > { %v939_v30 = vpop.permute.xlu0 %938  ;;  %v713_v9 = vadd.f32 %v649_v59, %v3217_v12  ;;  %v4844_v14 = vunpack.c.h.bf16 %v3349_v0  ;;  %v3392_v59 = vld [vmem:[%s2746_s28 + $0x58] sm:$0xff] }
 0x155   : > { %v1366_v35 = vadd.f32 %v1365_v25, %v1242_v27  ;;  %v1435_v36 = vadd.f32 %v1434_v26, %v1243_v28  ;;  %v1244_v37 = vmul.f32 %v939_v30, %v4864_v10  ;;  %v1245_v39 = vmul.f32 %v939_v30, %v4862_v11 }
 0x156   : > { %v944_v44 = vpop.permute.xlu1 %943  ;;  %1163 = vperm.xlu0 %2472, %v709_v29   ;;  %v715_v26 = vadd.f32 %v651_v15, %v3225_v18  ;;  %v4841_v27 = vunpack.c.l.bf16 %v3366_v24  ;;  %v4838_v28 = vunpack.c.h.bf16 %v3366_v24  ;;  %v653_v29 = vld [vmem:[%s4812_s2 + $0x1c8] sm:$0xff] }
 0x157   : > { %v1367_v47 = vadd.f32 %v1366_v35, %v1244_v37  ;;  %v1436_v48 = vadd.f32 %v1435_v36, %v1245_v39  ;;  %v1246_v53 = vmul.f32 %v944_v44, %v4861_v21  ;;  %v1247_v54 = vmul.f32 %v944_v44, %v4860_v22  ;;  %1218 = vperm.xlu1 %2473, %v720_v62   ;;  %v3379_v37 = vld [vmem:[%s2746_s28 + $0x50] sm:$0xff] }
 0x158   : > { %v949_v60 = vpop.permute.xlu0 %948  ;;  %v717_v39 = vadd.f32 %v653_v29, %v3230_v23  ;;  %v4834_v44 = vunpack.c.h.bf16 %v3379_v37 }
 0x159   : > { %v1368_v2 = vadd.f32 %v1367_v47, %v1246_v53  ;;  %v1437_v4 = vadd.f32 %v1436_v48, %v1247_v54  ;;  %v1248_v5 = vmul.f32 %v949_v60, %v4857_v32  ;;  %v1249_v7 = vmul.f32 %v949_v60, %v4854_v33  ;;  %v655_v47 = vld [vmem:[%s4812_s2 + $0x1d8] sm:$0xff] }
 0x15a   : > { %v954_v8 = vpop.permute.xlu1 %953  ;;  %1173 = vperm.xlu0 %2472, %v711_v55  }
 0x15b   : > { %1228 = vperm.xlu1 %2473, %v722_v3   ;;  %v1369_v16 = vadd.f32 %v1368_v2, %v1248_v5  ;;  %v1438_v17 = vadd.f32 %v1437_v4, %v1249_v7  ;;  %v1250_v62 = vmul.f32 %v954_v8, %v4853_v42  ;;  %v1251_v20 = vmul.f32 %v954_v8, %v4850_v58  ;;  %v657_v7 = vld [vmem:[%s4812_s2 + $0x1e8] sm:$0xff] }
 0x15c   : > { %v959_v12 = vpop.permute.xlu0 %958  ;;  %v4835_v3 = vunpack.c.l.bf16 %v3379_v37  ;;  %v719_v2 = vadd.f32 %v655_v47, %v3241_v31  ;;  %v4831_v4 = vunpack.c.l.bf16 %v3392_v59  ;;  %v4828_v5 = vunpack.c.h.bf16 %v3392_v59 }
 0x15d   : > { %v1370_v30 = vadd.f32 %v1369_v16, %v1250_v62  ;;  %v1439_v34 = vadd.f32 %v1438_v17, %v1251_v20  ;;  %v1252_v35 = vmul.f32 %v959_v12, %v4847_v13  ;;  %v1253_v36 = vmul.f32 %v959_v12, %v4844_v14  ;;  %v3405_v17 = vld [vmem:[%s2746_s28 + $0x60] sm:$0xff] }
 0x15e   : > { %v964_v25 = vpop.permute.xlu1 %963  ;;  %1183 = vperm.xlu0 %2472, %v713_v9   ;;  %v721_v31 = vadd.f32 %v657_v7, %v3257_v41  ;;  %v4825_v62 = vunpack.c.l.bf16 %v3405_v17  ;;  %v4822_v20 = vunpack.c.h.bf16 %v3405_v17 }
 0x15f   : > { %v1371_v48 = vadd.f32 %v1370_v30, %v1252_v35  ;;  %v1440_v53 = vadd.f32 %v1439_v34, %v1253_v36  ;;  %v1254_v54 = vmul.f32 %v964_v25, %v4841_v27  ;;  %v1255_v55 = vmul.f32 %v964_v25, %v4838_v28  ;;  %v3415_v34 = vld [vmem:[%s2746_s28 + $0x68] sm:$0xff] }
 0x160   : > { %v969_v23 = vpop.permute.xlu0 %968  ;;  %v4819_v41 = vunpack.c.l.bf16 %v3415_v34  ;;  %v4818_v36 = vunpack.c.h.bf16 %v3415_v34 }
 0x161   : > { %v1372_v8 = vadd.f32 %v1371_v48, %v1254_v54  ;;  %v1441_v9 = vadd.f32 %v1440_v53, %v1255_v55  ;;  %v1256_v15 = vmul.f32 %v969_v23, %v4835_v3  ;;  %v1257_v16 = vmul.f32 %v969_v23, %v4834_v44  ;;  %v3424_v54 = vld [vmem:[%s2746_s28 + $0x70] sm:$0xff] }
 0x162   : > { %v974_v18 = vpop.permute.xlu1 %973  ;;  %1193 = vperm.xlu0 %2472, %v715_v26   ;;  %v4821_v55 = vunpack.c.l.bf16 %v3424_v54  ;;  %v4820_v23 = vunpack.c.h.bf16 %v3424_v54 }
 0x163   : > { %v1373_v25 = vadd.f32 %v1372_v8, %v1256_v15  ;;  %v1442_v26 = vadd.f32 %v1441_v9, %v1257_v16  ;;  %v1258_v29 = vmul.f32 %v974_v18, %v4831_v4  ;;  %v1259_v30 = vmul.f32 %v974_v18, %v4828_v5  ;;  %v3433_v15 = vld [vmem:[%s2746_s28 + $0x78] sm:$0xff] }
 0x164   : > { %v979_v35 = vpop.permute.xlu0 %978 }
 0x165   : > { %v1443_v47 = vadd.f32 %v1442_v26, %v1259_v30  ;;  %v1260_v48 = vmul.f32 %v979_v35, %v4825_v62  ;;  %v1261_v53 = vmul.f32 %v979_v35, %v4822_v20 }
 0x166   : > { %v984_v60 = vpop.permute.xlu1 %983  ;;  %1203 = vperm.xlu0 %2472, %v717_v39   ;;  %v1374_v39 = vadd.f32 %v1373_v25, %v1258_v29  ;;  %v4823_v25 = vunpack.c.h.bf16 %v3433_v15 }
 0x167   : > { %v1444_v7 = vadd.f32 %v1443_v47, %v1261_v53  ;;  %v1262_v8 = vmul.f32 %v984_v60, %v4819_v41  ;;  %v1263_v9 = vmul.f32 %v984_v60, %v4818_v36  ;;  %v3442_v47 = vld [vmem:[%s2746_s28 + $0x80] sm:$0xff] }
 0x168   : > { %v989_v16 = vpop.permute.xlu0 %988  ;;  %v4827_v60 = vunpack.c.l.bf16 %v3442_v47 }
 0x169   : > { %v1445_v30 = vadd.f32 %v1444_v7, %v1263_v9  ;;  %v1264_v35 = vmul.f32 %v989_v16, %v4821_v55  ;;  %v3451_v7 = vld [vmem:[%s2746_s28 + $0x88] sm:$0xff] }
 0x16a   : > { %1213 = vperm.xlu0 %2472, %v719_v2   ;;  %v994_v12 = vpop.permute.xlu1 %993  ;;  %v1375_v2 = vadd.f32 %v1374_v39, %v1260_v48  ;;  %v1265_v39 = vmul.f32 %v989_v16, %v4820_v23  ;;  %v4826_v48 = vunpack.c.h.bf16 %v3442_v47  ;;  %v4830_v16 = vunpack.c.l.bf16 %v3451_v7 }
 0x16b   : > { %v4829_v23 = vunpack.c.h.bf16 %v3451_v7 }
 0x16c   : > { %v1376_v29 = vadd.f32 %v1375_v2, %v1262_v8  ;;  %v1446_v36 = vadd.f32 %v1445_v30, %v1265_v39  ;;  %v1267_v2 = vmul.f32 %v994_v12, %v4823_v25  ;;  %v999_v8 = vpop.permute.xlu0 %998 }
 0x16d   : > { %v1269_v30 = vmul.f32 %v999_v8, %v4826_v48 }
 0x16e   : > { %1223 = vperm.xlu0 %2472, %v721_v31   ;;  %v1004_v18 = vpop.permute.xlu1 %1003  ;;  %v4824_v31 = vunpack.c.l.bf16 %v3433_v15  ;;  %v1377_v53 = vadd.f32 %v1376_v29, %v1264_v35  ;;  %v1447_v20 = vadd.f32 %v1446_v36, %v1267_v2  ;;  %v1268_v29 = vmul.f32 %v999_v8, %v4827_v60  ;;  %v3460_v35 = vld [vmem:[%s2746_s28 + $0x90] sm:$0xff] }
 0x16f   : > { %v4832_v39 = vunpack.c.h.bf16 %v3460_v35  ;;  %v1271_v36 = vmul.f32 %v1004_v18, %v4829_v23 }
 0x170   : > { %v1266_v41 = vmul.f32 %v994_v12, %v4824_v31  ;;  %v4833_v12 = vunpack.c.l.bf16 %v3460_v35  ;;  %v1448_v62 = vadd.f32 %v1447_v20, %v1269_v30  ;;  %v1009_v2 = vpop.permute.xlu0 %1008 }
 0x171   : > { %v1273_v20 = vmul.f32 %v1009_v2, %v4832_v39 }
 0x172   : > { %v1014_v26 = vpop.permute.xlu1 %1013  ;;  %v1378_v55 = vadd.f32 %v1377_v53, %v1266_v41  ;;  %v1270_v41 = vmul.f32 %v1004_v18, %v4830_v16  ;;  %v3469_v53 = vld [vmem:[%s2746_s28 + $0x98] sm:$0xff]  ;;  %v1449_v5 = vadd.f32 %v1448_v62, %v1271_v36 }
 0x173   : > { %v4837_v8 = vunpack.c.l.bf16 %v3469_v53  ;;  %v4836_v48 = vunpack.c.h.bf16 %v3469_v53 }
 0x174   : > { %v1379_v31 = vadd.f32 %v1378_v55, %v1268_v29  ;;  %v1272_v55 = vmul.f32 %v1009_v2, %v4833_v12  ;;  %v3478_v29 = vld [vmem:[%s2746_s28 + $0xa0] sm:$0xff]  ;;  %v1450_v4 = vadd.f32 %v1449_v5, %v1273_v20  ;;  %v1019_v36 = vpop.permute.xlu0 %1018 }
 0x175   : > { %v4840_v18 = vunpack.c.l.bf16 %v3478_v29  ;;  %v4839_v23 = vunpack.c.h.bf16 %v3478_v29  ;;  %v1275_v62 = vmul.f32 %v1014_v26, %v4836_v48 }
 0x176   : > { %v1024_v9 = vpop.permute.xlu1 %1023  ;;  %v1380_v60 = vadd.f32 %v1379_v31, %v1270_v41  ;;  %v1274_v31 = vmul.f32 %v1014_v26, %v4837_v8  ;;  %v3487_v41 = vld [vmem:[%s2746_s28 + $0xa8] sm:$0xff] }
 0x177   : > { %v4843_v2 = vunpack.c.l.bf16 %v3487_v41  ;;  %v4842_v39 = vunpack.c.h.bf16 %v3487_v41  ;;  %v1451_v3 = vadd.f32 %v1450_v4, %v1275_v62  ;;  %v1276_v5 = vmul.f32 %v1019_v36, %v4840_v18 }
 0x178   : > { %v1381_v16 = vadd.f32 %v1380_v60, %v1272_v55  ;;  %v1277_v60 = vmul.f32 %v1019_v36, %v4839_v23  ;;  %v3498_v55 = vld [vmem:[%s2746_s28 + $0xb0] sm:$0xff] }
 0x179   : > { %v4846_v26 = vunpack.c.l.bf16 %v3498_v55  ;;  %v4845_v20 = vunpack.c.h.bf16 %v3498_v55  ;;  %v1278_v28 = vmul.f32 %v1024_v9, %v4843_v2  ;;  %v1279_v4 = vmul.f32 %v1024_v9, %v4842_v39 }
 0x17a   : > { %v1034_v25 = vpop.permute.xlu1 %1033  ;;  %v1382_v44 = vadd.f32 %v1381_v16, %v1274_v31  ;;  %v1452_v8 = vadd.f32 %v1451_v3, %v1277_v60  ;;  %v3507_v16 = vld [vmem:[%s2746_s28 + $0xb8] sm:$0xff]  ;;  %v1029_v31 = vpop.permute.xlu0 %1028 }
 0x17b   : > { %v4849_v36 = vunpack.c.l.bf16 %v3507_v16  ;;  %v4848_v23 = vunpack.c.h.bf16 %v3507_v16  ;;  %v1280_v3 = vmul.f32 %v1029_v31, %v4846_v26 }
 0x17c   : > { %v1383_v48 = vadd.f32 %v1382_v44, %v1276_v5  ;;  %v1453_v27 = vadd.f32 %v1452_v8, %v1279_v4  ;;  %v1281_v44 = vmul.f32 %v1029_v31, %v4845_v20  ;;  %v3516_v5 = vld [vmem:[%s2746_s28 + $0xc0] sm:$0xff]  ;;  %v3525_v8 = vld [vmem:[%s2746_s28 + $0xc8] sm:$0xff] }
 0x17d   : > { %v4852_v9 = vunpack.c.l.bf16 %v3516_v5  ;;  %v4851_v60 = vunpack.c.h.bf16 %v3516_v5  ;;  %v4856_v31 = vunpack.c.l.bf16 %v3525_v8  ;;  %v4855_v20 = vunpack.c.h.bf16 %v3525_v8 }
 0x17e   : > { %v1044_v30 = vpop.permute.xlu1 %1043  ;;  %v1384_v18 = vadd.f32 %v1383_v48, %v1278_v28  ;;  %v1454_v14 = vadd.f32 %v1453_v27, %v1281_v44  ;;  %v1282_v28 = vmul.f32 %v1034_v25, %v4849_v36  ;;  %v1283_v48 = vmul.f32 %v1034_v25, %v4848_v23  ;;  %v1039_v4 = vpop.permute.xlu0 %1038 }
 0x17f   : > { %v1284_v27 = vmul.f32 %v1039_v4, %v4852_v9  ;;  %v3548_v9 = vld [vmem:[%s2746_s28 + $0xe0] sm:$0xff] }
 0x180   : > { %v1385_v2 = vadd.f32 %v1384_v18, %v1280_v3  ;;  %v1455_v13 = vadd.f32 %v1454_v14, %v1283_v48  ;;  %v1285_v18 = vmul.f32 %v1039_v4, %v4851_v60  ;;  %v3534_v3 = vld [vmem:[%s2746_s28 + $0xd0] sm:$0xff]  ;;  %v1286_v14 = vmul.f32 %v1044_v30, %v4856_v31 }
 0x181   : > { %v4859_v44 = vunpack.c.l.bf16 %v3534_v3  ;;  %v4858_v23 = vunpack.c.h.bf16 %v3534_v3  ;;  %v3560_v31 = vld [vmem:[%s2746_s28 + $0xf0] sm:$0xff] }
 0x182   : > { %v3491_v12 = vpop.permute.xlu1 %1053  ;;  %v1386_v26 = vadd.f32 %v1385_v2, %v1282_v28  ;;  %v1456_v58 = vadd.f32 %v1455_v13, %v1285_v18  ;;  %v1287_v2 = vmul.f32 %v1044_v30, %v4855_v20  ;;  %v3543_v28 = vld [vmem:[%s2746_s28 + $0xd8] sm:$0xff]  ;;  %v1049_v48 = vpop.permute.xlu0 %1048  ;;  %v3555_v18 = vld [vmem:[%s2746_s28 + $0xe8] sm:$0xff]  ;;  %v4866_v30 = vunpack.c.l.bf16 %v3548_v9 }
 0x183   : > { %v4863_v4 = vunpack.c.l.bf16 %v3543_v28  ;;  %v4865_v60 = vunpack.c.h.bf16 %v3543_v28  ;;  %v1288_v13 = vmul.f32 %v1049_v48, %v4859_v44  ;;  %v4867_v20 = vunpack.c.h.bf16 %v3548_v9 }
 0x184   : > { %v1387_v36 = vadd.f32 %v1386_v26, %v1284_v27  ;;  %v1457_v26 = vadd.f32 %v1456_v58, %v1287_v2  ;;  %v1289_v27 = vmul.f32 %v1049_v48, %v4858_v23  ;;  %v4870_v32 = vunpack.c.l.bf16 %v3555_v18  ;;  %v659_v58 = vld [vmem:[%s4812_s2 + $0x1f8] sm:$0xff] }
 0x185   : > { %v1290_v48 = vmul.f32 %v3491_v12, %v4863_v4  ;;  %v1291_v23 = vmul.f32 %v3491_v12, %v4865_v60  ;;  %v4871_v44 = vunpack.c.l.bf16 %v3560_v31 }
 0x186   : > { %v1059_v62 = vpop.permute.xlu1 %1058  ;;  %v1388_v33 = vadd.f32 %v1387_v36, %v1286_v14  ;;  %v4869_v36 = vunpack.c.h.bf16 %v3555_v18  ;;  %v1458_v2 = vadd.f32 %v1457_v26, %v1289_v27  ;;  %v4872_v26 = vunpack.c.h.bf16 %v3560_v31  ;;  %v3580_v27 = vld [vmem:[%s2746_s28 + $0xf8] sm:$0xff] }
 0x187   : > { %v1292_v11 = vmul.f32 %v1059_v62, %v4866_v30  ;;  %v3587_v30 = vld [vmem:[%s2746_s28 + $0x100] sm:$0xff] }
 0x188   : > { %v1389_v14 = vadd.f32 %v1388_v33, %v1288_v13  ;;  %v1293_v33 = vmul.f32 %v1059_v62, %v4867_v20  ;;  %v1459_v10 = vadd.f32 %v1458_v2, %v1291_v23  ;;  %v4874_v62 = vunpack.c.l.bf16 %v3580_v27 }
 0x189   : > { %v4875_v20 = vunpack.c.h.bf16 %v3580_v27 }
 0x18a   : > { %v1064_v39 = vpop.permute.xlu1 %1063  ;;  %v1390_v4 = vadd.f32 %v1389_v14, %v1290_v48  ;;  %v3596_v14 = vld [vmem:[%s2746_s28 + $0x108] sm:$0xff] }
 0x18b   : > { %v1294_v12 = vmul.f32 %v1064_v39, %v4870_v32  ;;  %v1295_v60 = vmul.f32 %v1064_v39, %v4869_v36  ;;  %v4893_v36 = vunpack.c.h.bf16 %v3587_v30  ;;  %v3601_v32 = vld [vmem:[%s2746_s28 + $0x110] sm:$0xff] }
 0x18c   : > { %v1391_v63 = vadd.f32 %v1390_v4, %v1292_v11  ;;  %v4879_v11 = vunpack.c.l.bf16 %v3596_v14 }
 0x18e   : > { %v1069_v25 = vpop.permute.xlu1 %1068  ;;  %v1392_v39 = vadd.f32 %v1391_v63, %v1294_v12  ;;  %v4880_v12 = vunpack.c.l.bf16 %v3601_v32 }
 0x18f   : > { %v1296_v23 = vmul.f32 %v1069_v25, %v4871_v44 }
 0x192   : > { %v1079_v42 = vpop.permute.xlu1 %1078 }
 0x196   : > { %v1084_v22 = vpop.permute.xlu1 %1083 }
 0x19a   : > { %v1089_v2 = vpop.permute.xlu1 %1088 }
 0x1ad   : > { %v595_v21 = vpop.xlane.xlu0 %594 }
 0x1ae   : > { %v723_v13 = vadd.f32 %v659_v58, %v595_v21  ;;  %v1460_v21 = vadd.f32 %v1459_v10, %v1293_v33  ;;  %v1297_v58 = vmul.f32 %v1069_v25, %v4872_v26  ;;  %v4892_v10 = vunpack.c.h.bf16 %v3596_v14  ;;  %v3606_v25 = vld [vmem:[%s2746_s28 + $0x118] sm:$0xff] }
 0x1af   : > { %v1393_v33 = vadd.f32 %v1392_v39, %v1296_v23  ;;  %v1301_v23 = vmul.f32 %v1079_v42, %v4893_v36  ;;  %v4887_v61 = vunpack.c.h.bf16 %v3606_v25 }
 0x1b0   : > { %1233 = vperm.xlu0 %2472, %v723_v13   ;;  %v1461_v48 = vadd.f32 %v1460_v21, %v1295_v60  ;;  %v4877_v13 = vunpack.c.l.bf16 %v3587_v30  ;;  %v4882_v21 = vunpack.c.h.bf16 %v3601_v32 }
 0x1b2   : > { %v1462_v44 = vadd.f32 %v1461_v48, %v1297_v58  ;;  %v1300_v26 = vmul.f32 %v1079_v42, %v4877_v13  ;;  %v4881_v48 = vunpack.c.l.bf16 %v3606_v25  ;;  %v1304_v42 = vmul.f32 %v1089_v2, %v4880_v12  ;;  %v3638_v12 = vld [vmem:[%s2746_s28 + $0x128] sm:$0xff] }
 0x1b5   : > { %v1074_v4 = vpop.permute.xlu0 %1073 }
 0x1b6   : > { %v1298_v63 = vmul.f32 %v1074_v4, %v4874_v62  ;;  %v1299_v60 = vmul.f32 %v1074_v4, %v4875_v20  ;;  %v1094_v62 = vpop.permute.xlu1 %1093  ;;  %v1302_v4 = vmul.f32 %v1084_v22, %v4879_v11  ;;  %v1303_v20 = vmul.f32 %v1084_v22, %v4892_v10 }
 0x1b7   : > { %v4883_v11 = vunpack.c.h.bf16 %v3625_v57  ;;  %v1306_v22 = vmul.f32 %v1094_v62, %v4881_v48  ;;  %v4885_v48 = vunpack.c.h.bf16 %v3638_v12 }
 0x1b8   : > { %v1394_v39 = vadd.f32 %v1393_v33, %v1298_v63  ;;  %v1463_v58 = vadd.f32 %v1462_v44, %v1299_v60  ;;  %v1305_v44 = vmul.f32 %v1089_v2, %v4882_v21  ;;  %v4886_v60 = vunpack.c.l.bf16 %v3625_v57  ;;  %v3647_v21 = vld [vmem:[%s2746_s28 + $0x130] sm:$0xff] }
 0x1ba   : > { %v1395_v13 = vadd.f32 %v1394_v39, %v1300_v26  ;;  %v1464_v56 = vadd.f32 %v1463_v58, %v1301_v23  ;;  %v1307_v26 = vmul.f32 %v1094_v62, %v4887_v61  ;;  %v1099_v58 = vpop.permute.xlu1 %1098  ;;  %v1104_v62 = vpop.permute.xlu0 %1103 }
 0x1bc   : > { %v1396_v33 = vadd.f32 %v1395_v13, %v1302_v4  ;;  %v1465_v63 = vadd.f32 %v1464_v56, %v1303_v20  ;;  %v1308_v56 = vmul.f32 %v1099_v58, %v4886_v60  ;;  %v1309_v20 = vmul.f32 %v1099_v58, %v4883_v11 }
 0x1bd   : > { %v4884_v4 = vunpack.c.l.bf16 %v3638_v12 }
 0x1be   : > { %v1397_v23 = vadd.f32 %v1396_v33, %v1304_v42  ;;  %v1466_v39 = vadd.f32 %v1465_v63, %v1305_v44  ;;  %v4889_v33 = vunpack.c.l.bf16 %v3647_v21  ;;  %v4888_v63 = vunpack.c.h.bf16 %v3647_v21 }
 0x1c0   : > { %v1398_v2 = vadd.f32 %v1397_v23, %v1306_v22  ;;  %v1467_v13 = vadd.f32 %v1466_v39, %v1307_v26  ;;  %v1310_v22 = vmul.f32 %v1104_v62, %v4884_v4  ;;  %v1311_v26 = vmul.f32 %v1104_v62, %v4885_v48  ;;  %v1109_v23 = vpop.permute.xlu1 %1108  ;;  %v3656_v39 = vld [vmem:[%s2746_s28 + $0x138] sm:$0xff]  ;;  %v3665_v4 = vld [vmem:[%s2746_s28 + $0x140] sm:$0xff]  ;;  %v1114_v62 = vpop.permute.xlu0 %1113 }
 0x1c1   : > { %5002 = vst [vmem:[#allocation11_spill] sm:$0xff] %v3665_v4  ;;  %v4895_v61 = vunpack.c.l.bf16 %v3665_v4 }
 0x1c2   : > { %v1399_v42 = vadd.f32 %v1398_v2, %v1308_v56  ;;  %v1468_v44 = vadd.f32 %v1467_v13, %v1309_v20  ;;  %v1312_v2 = vmul.f32 %v1109_v23, %v4889_v33  ;;  %v1313_v13 = vmul.f32 %v1109_v23, %v4888_v63  ;;  %v3674_v23 = vld [vmem:[%s2746_s28 + $0x148] sm:$0xff] }
 0x1c3   : > { %v4890_v56 = vunpack.c.l.bf16 %v3656_v39  ;;  %v4891_v20 = vunpack.c.h.bf16 %v3656_v39  ;;  %5003 = vst [vmem:[#allocation12_spill] sm:$0xff] %v3674_v23 }
 0x1c4   : > { %v1400_v58 = vadd.f32 %v1399_v42, %v1310_v22  ;;  %v1469_v11 = vadd.f32 %v1468_v44, %v1311_v26  ;;  %v4894_v42 = vunpack.c.h.bf16 %v3665_v4  ;;  %v1119_v26 = vpop.permute.xlu1 %1118 }
 0x1c5   : > { %v1314_v44 = vmul.f32 %v1114_v62, %v4890_v56  ;;  %v1315_v22 = vmul.f32 %v1114_v62, %v4891_v20  ;;  %v3683_v56 = vld [vmem:[%s2746_s28 + $0x150] sm:$0xff]  ;;  %v1124_v62 = vpop.permute.xlu0 %1123 }
 0x1c6   : > { %v1401_v48 = vadd.f32 %v1400_v58, %v1312_v2  ;;  %v1470_v60 = vadd.f32 %v1469_v11, %v1313_v13  ;;  %v1316_v58 = vmul.f32 %v1119_v26, %v4895_v61  ;;  %v1317_v11 = vmul.f32 %v1119_v26, %v4894_v42  ;;  %5004 = vst [vmem:[#allocation13_spill] sm:$0xff] %v3683_v56  ;;  %v3692_v26 = vld [vmem:[%s2746_s28 + $0x158] sm:$0xff] }
 0x1c7   : > { %v4896_v2 = vunpack.c.l.bf16 %v3674_v23  ;;  %v4897_v13 = vunpack.c.h.bf16 %v3674_v23  ;;  %v4901_v36 = vunpack.c.l.bf16 %v3683_v56  ;;  %5005 = vst [vmem:[#allocation14_spill] sm:$0xff] %v3692_v26 }
 0x1c8   : > { %v1402_v63 = vadd.f32 %v1401_v48, %v1314_v44  ;;  %v1471_v33 = vadd.f32 %v1470_v60, %v1315_v22  ;;  %v4900_v48 = vunpack.c.h.bf16 %v3683_v56  ;;  %v1129_v22 = vpop.permute.xlu1 %1128 }
 0x1c9   : > { %v1318_v60 = vmul.f32 %v1124_v62, %v4896_v2  ;;  %v1319_v44 = vmul.f32 %v1124_v62, %v4897_v13  ;;  %v3701_v2 = vld [vmem:[%s2746_s28 + $0x160] sm:$0xff]  ;;  %v1134_v62 = vpop.permute.xlu0 %1133 }
 0x1ca   : > { %v1403_v20 = vadd.f32 %v1402_v63, %v1316_v58  ;;  %v1472_v10 = vadd.f32 %v1471_v33, %v1317_v11  ;;  %v1320_v63 = vmul.f32 %v1129_v22, %v4901_v36  ;;  %v1321_v33 = vmul.f32 %v1129_v22, %v4900_v48  ;;  %5006 = vst [vmem:[#allocation15_spill] sm:$0xff] %v3701_v2  ;;  %v3710_v22 = vld [vmem:[%s2746_s28 + $0x168] sm:$0xff] }
 0x1cb   : > { %v4902_v58 = vunpack.c.l.bf16 %v3692_v26  ;;  %v4903_v11 = vunpack.c.h.bf16 %v3692_v26  ;;  %v4907_v50 = vunpack.c.l.bf16 %v3701_v2  ;;  %5007 = vst [vmem:[#allocation16_spill] sm:$0xff] %v3710_v22 }
 0x1cc   : > { %v1404_v42 = vadd.f32 %v1403_v20, %v1318_v60  ;;  %v1473_v61 = vadd.f32 %v1472_v10, %v1319_v44  ;;  %v4906_v10 = vunpack.c.h.bf16 %v3701_v2  ;;  %v1139_v44 = vpop.permute.xlu1 %1138 }
 0x1cd   : > { %v1322_v20 = vmul.f32 %v1134_v62, %v4902_v58  ;;  %v1323_v60 = vmul.f32 %v1134_v62, %v4903_v11  ;;  %v3719_v58 = vld [vmem:[%s2746_s28 + $0x170] sm:$0xff]  ;;  %v1144_v62 = vpop.permute.xlu0 %1143 }
 0x1ce   : > { %v1405_v13 = vadd.f32 %v1404_v42, %v1320_v63  ;;  %v1474_v51 = vadd.f32 %v1473_v61, %v1321_v33  ;;  %v1324_v42 = vmul.f32 %v1139_v44, %v4907_v50  ;;  %v1325_v61 = vmul.f32 %v1139_v44, %v4906_v10  ;;  %5008 = vst [vmem:[#allocation17_spill] sm:$0xff] %v3719_v58  ;;  %v3728_v44 = vld [vmem:[%s2746_s28 + $0x178] sm:$0xff] }
 0x1cf   : > { %v4908_v63 = vunpack.c.l.bf16 %v3710_v22  ;;  %v4909_v33 = vunpack.c.h.bf16 %v3710_v22  ;;  %v4915_v45 = vunpack.c.l.bf16 %v3719_v58  ;;  %5009 = vst [vmem:[#allocation18_spill] sm:$0xff] %v3728_v44 }
 0x1d0   : > { %v1406_v48 = vadd.f32 %v1405_v13, %v1322_v20  ;;  %v1475_v36 = vadd.f32 %v1474_v51, %v1323_v60  ;;  %v4914_v51 = vunpack.c.h.bf16 %v3719_v58  ;;  %v1149_v60 = vpop.permute.xlu1 %1148 }
 0x1d1   : > { %v1326_v13 = vmul.f32 %v1144_v62, %v4908_v63  ;;  %v1327_v20 = vmul.f32 %v1144_v62, %v4909_v33  ;;  %v3737_v63 = vld [vmem:[%s2746_s28 + $0x180] sm:$0xff]  ;;  %v1154_v62 = vpop.permute.xlu0 %1153 }
 0x1d2   : > { %v1407_v11 = vadd.f32 %v1406_v48, %v1324_v42  ;;  %v1476_v49 = vadd.f32 %v1475_v36, %v1325_v61  ;;  %v1328_v48 = vmul.f32 %v1149_v60, %v4915_v45  ;;  %v1329_v36 = vmul.f32 %v1149_v60, %v4914_v51  ;;  %5010 = vst [vmem:[#allocation19_spill] sm:$0xff] %v3737_v63  ;;  %v3746_v60 = vld [vmem:[%s2746_s28 + $0x188] sm:$0xff] }
 0x1d3   : > { %v4916_v42 = vunpack.c.l.bf16 %v3728_v44  ;;  %v4917_v61 = vunpack.c.h.bf16 %v3728_v44  ;;  %v4923_v2 = vunpack.c.l.bf16 %v3737_v63  ;;  %5011 = vst [vmem:[#allocation20_spill] sm:$0xff] %v3746_v60 }
 0x1d4   : > { %v1408_v10 = vadd.f32 %v1407_v11, %v1326_v13  ;;  %v1477_v50 = vadd.f32 %v1476_v49, %v1327_v20  ;;  %v4922_v49 = vunpack.c.h.bf16 %v3737_v63  ;;  %v1159_v20 = vpop.permute.xlu1 %1158 }
 0x1d5   : > { %v1330_v11 = vmul.f32 %v1154_v62, %v4916_v42  ;;  %v1331_v13 = vmul.f32 %v1154_v62, %v4917_v61  ;;  %v3755_v42 = vld [vmem:[%s2746_s28 + $0x190] sm:$0xff]  ;;  %v1164_v62 = vpop.permute.xlu0 %1163 }
 0x1d6   : > { %v1409_v33 = vadd.f32 %v1408_v10, %v1328_v48  ;;  %v1478_v22 = vadd.f32 %v1477_v50, %v1329_v36  ;;  %v1332_v10 = vmul.f32 %v1159_v20, %v4923_v2  ;;  %v1333_v50 = vmul.f32 %v1159_v20, %v4922_v49  ;;  %5012 = vst [vmem:[#allocation21_spill] sm:$0xff] %v3755_v42  ;;  %v3764_v20 = vld [vmem:[%s2746_s28 + $0x198] sm:$0xff] }
 0x1d7   : > { %v4924_v48 = vunpack.c.l.bf16 %v3746_v60  ;;  %v4925_v36 = vunpack.c.h.bf16 %v3746_v60  ;;  %v4931_v58 = vunpack.c.l.bf16 %v3755_v42  ;;  %5013 = vst [vmem:[#allocation22_spill] sm:$0xff] %v3764_v20 }
 0x1d8   : > { %v1410_v51 = vadd.f32 %v1409_v33, %v1330_v11  ;;  %v1479_v45 = vadd.f32 %v1478_v22, %v1331_v13  ;;  %v4930_v22 = vunpack.c.h.bf16 %v3755_v42  ;;  %v1169_v13 = vpop.permute.xlu1 %1168 }
 0x1d9   : > { %v1334_v33 = vmul.f32 %v1164_v62, %v4924_v48  ;;  %v1335_v11 = vmul.f32 %v1164_v62, %v4925_v36  ;;  %v3773_v48 = vld [vmem:[%s2746_s28 + $0x1a0] sm:$0xff]  ;;  %v1174_v62 = vpop.permute.xlu0 %1173 }
 0x1da   : > { %v1411_v61 = vadd.f32 %v1410_v51, %v1332_v10  ;;  %v1480_v44 = vadd.f32 %v1479_v45, %v1333_v50  ;;  %v1336_v51 = vmul.f32 %v1169_v13, %v4931_v58  ;;  %v1337_v45 = vmul.f32 %v1169_v13, %v4930_v22  ;;  %5014 = vst [vmem:[#allocation23_spill] sm:$0xff] %v3773_v48  ;;  %v3782_v13 = vld [vmem:[%s2746_s28 + $0x1a8] sm:$0xff] }
 0x1db   : > { %v4932_v10 = vunpack.c.l.bf16 %v3764_v20  ;;  %v4933_v50 = vunpack.c.h.bf16 %v3764_v20  ;;  %v4939_v63 = vunpack.c.l.bf16 %v3773_v48  ;;  %5015 = vst [vmem:[#allocation24_spill] sm:$0xff] %v3782_v13 }
 0x1dc   : > { %v1412_v49 = vadd.f32 %v1411_v61, %v1334_v33  ;;  %v1481_v2 = vadd.f32 %v1480_v44, %v1335_v11  ;;  %v4938_v44 = vunpack.c.h.bf16 %v3773_v48  ;;  %v1179_v11 = vpop.permute.xlu1 %1178 }
 0x1dd   : > { %v1338_v61 = vmul.f32 %v1174_v62, %v4932_v10  ;;  %v1339_v33 = vmul.f32 %v1174_v62, %v4933_v50  ;;  %v3791_v10 = vld [vmem:[%s2746_s28 + $0x1b0] sm:$0xff]  ;;  %v1184_v62 = vpop.permute.xlu0 %1183 }
 0x1de   : > { %v1413_v36 = vadd.f32 %v1412_v49, %v1336_v51  ;;  %v1482_v60 = vadd.f32 %v1481_v2, %v1337_v45  ;;  %v1340_v49 = vmul.f32 %v1179_v11, %v4939_v63  ;;  %v1341_v2 = vmul.f32 %v1179_v11, %v4938_v44  ;;  %5016 = vst [vmem:[#allocation25_spill] sm:$0xff] %v3791_v10  ;;  %v3800_v11 = vld [vmem:[%s2746_s28 + $0x1b8] sm:$0xff] }
 0x1df   : > { %v4940_v51 = vunpack.c.l.bf16 %v3782_v13  ;;  %v4941_v45 = vunpack.c.h.bf16 %v3782_v13  ;;  %v4947_v42 = vunpack.c.l.bf16 %v3791_v10  ;;  %5017 = vst [vmem:[#allocation26_spill] sm:$0xff] %v3800_v11 }
 0x1e0   : > { %v1414_v22 = vadd.f32 %v1413_v36, %v1338_v61  ;;  %v1483_v58 = vadd.f32 %v1482_v60, %v1339_v33  ;;  %v4946_v60 = vunpack.c.h.bf16 %v3791_v10  ;;  %v1189_v33 = vpop.permute.xlu1 %1188 }
 0x1e1   : > { %v1342_v36 = vmul.f32 %v1184_v62, %v4940_v51  ;;  %v1343_v61 = vmul.f32 %v1184_v62, %v4941_v45  ;;  %v3809_v51 = vld [vmem:[%s2746_s28 + $0x1c0] sm:$0xff]  ;;  %v1194_v62 = vpop.permute.xlu0 %1193 }
 0x1e2   : > { %v1415_v50 = vadd.f32 %v1414_v22, %v1340_v49  ;;  %v1484_v20 = vadd.f32 %v1483_v58, %v1341_v2  ;;  %v1344_v22 = vmul.f32 %v1189_v33, %v4947_v42  ;;  %v1345_v58 = vmul.f32 %v1189_v33, %v4946_v60  ;;  %5018 = vst [vmem:[#allocation27_spill] sm:$0xff] %v3809_v51  ;;  %v3818_v33 = vld [vmem:[%s2746_s28 + $0x1c8] sm:$0xff] }
 0x1e3   : > { %v4948_v49 = vunpack.c.l.bf16 %v3800_v11  ;;  %v4949_v2 = vunpack.c.h.bf16 %v3800_v11  ;;  %v4955_v48 = vunpack.c.l.bf16 %v3809_v51  ;;  %5019 = vst [vmem:[#allocation28_spill] sm:$0xff] %v3818_v33 }
 0x1e4   : > { %v1416_v44 = vadd.f32 %v1415_v50, %v1342_v36  ;;  %v1485_v63 = vadd.f32 %v1484_v20, %v1343_v61  ;;  %v4954_v20 = vunpack.c.h.bf16 %v3809_v51  ;;  %v1199_v61 = vpop.permute.xlu1 %1198 }
 0x1e5   : > { %v1346_v50 = vmul.f32 %v1194_v62, %v4948_v49  ;;  %v1347_v36 = vmul.f32 %v1194_v62, %v4949_v2  ;;  %v3827_v49 = vld [vmem:[%s2746_s28 + $0x1d0] sm:$0xff]  ;;  %v1204_v62 = vpop.permute.xlu0 %1203 }
 0x1e6   : > { %v1417_v45 = vadd.f32 %v1416_v44, %v1344_v22  ;;  %v1486_v13 = vadd.f32 %v1485_v63, %v1345_v58  ;;  %v1348_v44 = vmul.f32 %v1199_v61, %v4955_v48  ;;  %v1349_v63 = vmul.f32 %v1199_v61, %v4954_v20  ;;  %5020 = vst [vmem:[#allocation29_spill] sm:$0xff] %v3827_v49  ;;  %v3836_v61 = vld [vmem:[%s2746_s28 + $0x1d8] sm:$0xff] }
 0x1e7   : > { %v4956_v22 = vunpack.c.l.bf16 %v3818_v33  ;;  %v4957_v58 = vunpack.c.h.bf16 %v3818_v33  ;;  %v4963_v10 = vunpack.c.l.bf16 %v3827_v49  ;;  %5021 = vst [vmem:[#allocation30_spill] sm:$0xff] %v3836_v61 }
 0x1e8   : > { %v1418_v60 = vadd.f32 %v1417_v45, %v1346_v50  ;;  %v1487_v42 = vadd.f32 %v1486_v13, %v1347_v36  ;;  %v4962_v13 = vunpack.c.h.bf16 %v3827_v49  ;;  %v1209_v36 = vpop.permute.xlu1 %1208  ;;  %v3863_v49 = vld [vmem:[%s2746_s28 + $0x1f0] sm:$0xff] }
 0x1e9   : > { %v1350_v45 = vmul.f32 %v1204_v62, %v4956_v22  ;;  %v1351_v50 = vmul.f32 %v1204_v62, %v4957_v58  ;;  %v3845_v22 = vld [vmem:[%s2746_s28 + $0x1e0] sm:$0xff]  ;;  %v1214_v62 = vpop.permute.xlu0 %1213  ;;  %5024 = vst [vmem:[#allocation33_spill] sm:$0xff] %v3863_v49 }
 0x1ea   : > { %v1419_v2 = vadd.f32 %v1418_v60, %v1348_v44  ;;  %v1488_v11 = vadd.f32 %v1487_v42, %v1349_v63  ;;  %v1352_v60 = vmul.f32 %v1209_v36, %v4963_v10  ;;  %v1353_v42 = vmul.f32 %v1209_v36, %v4962_v13  ;;  %5022 = vst [vmem:[#allocation31_spill] sm:$0xff] %v3845_v22  ;;  %v3854_v36 = vld [vmem:[%s2746_s28 + $0x1e8] sm:$0xff] }
 0x1eb   : > { %v4966_v44 = vunpack.c.l.bf16 %v3836_v61  ;;  %v4969_v63 = vunpack.c.h.bf16 %v3836_v61  ;;  %v4971_v51 = vunpack.c.l.bf16 %v3845_v22  ;;  %5023 = vst [vmem:[#allocation32_spill] sm:$0xff] %v3854_v36 }
 0x1ec   : > { %v1420_v20 = vadd.f32 %v1419_v2, %v1350_v45  ;;  %v1489_v48 = vadd.f32 %v1488_v11, %v1351_v50  ;;  %v4970_v11 = vunpack.c.h.bf16 %v3845_v22  ;;  %v1219_v50 = vpop.permute.xlu1 %1218 }
 0x1ed   : > { %v1354_v2 = vmul.f32 %v1214_v62, %v4966_v44  ;;  %v1355_v45 = vmul.f32 %v1214_v62, %v4969_v63  ;;  %v1224_v44 = vpop.permute.xlu0 %1223  ;;  %v3866_v63 = vld [vmem:[%s2746_s28 + $0x1f8] sm:$0xff]  ;;  %s4557_s28 = scalar_lea.vmem [#allocation5], %s2272_s25  ;;  %s2413_s25 = sshll.u32 %s2664_s22, 13 }
 0x1ee   : > { %v1421_v58 = vadd.f32 %v1420_v20, %v1352_v60  ;;  %v1490_v33 = vadd.f32 %v1489_v48, %v1353_v42  ;;  %v1356_v20 = vmul.f32 %v1219_v50, %v4971_v51  ;;  %v1357_v48 = vmul.f32 %v1219_v50, %v4970_v11  ;;  %5025 = vst [vmem:[#allocation34_spill] sm:$0xff] %v3866_v63  ;;  %s2137_s12 = sshll.u32 %s4557_s28, 4  ;;  %s4701_s8 = scalar_lea.hbm %s4814_s4, %s2413_s25  ;;  %s4715_s12 = int_to_ptr.vmem [resolvable:$true] %s2137_s12 }
 0x1ef   : > { %v4978_v60 = vunpack.c.l.bf16 %v3854_v36  ;;  %v4979_v42 = vunpack.c.h.bf16 %v3854_v36  ;;  %v4990_v22 = vunpack.c.l.bf16 %v3866_v63  ;;  %s2508_s11 = scalar_lea.vmem %s4715_s12, 8192  ;;  %p2515_p7 = scmp.lt.s32.totalorder %s4715_s12, %s2513_s17 }
 0x1f0   : > { %v1422_v13 = vadd.f32 %v1421_v58, %v1354_v2  ;;  %v1491_v10 = vadd.f32 %v1490_v33, %v1355_v45  ;;  %v4984_v58 = vunpack.c.l.bf16 %v3863_v49  ;;  %v4989_v33 = vunpack.c.h.bf16 %v3863_v49  ;;  %v1229_v50 = vpop.permute.xlu1 %1228  ;;  %p2509_p12 = scmp.ne.s32.totalorder %s4715_s12, %s2508_s11  ;;  %p2516_p8 = scmp.lt.s32.totalorder %s2514_s26, %s2508_s11 }
 0x1f1   : > { %v1358_v2 = vmul.f32 %v1224_v44, %v4978_v60  ;;  %v1359_v45 = vmul.f32 %v1224_v44, %v4979_v42 }
 0x1f2   : > { %v1423_v61 = vadd.f32 %v1422_v13, %v1356_v20  ;;  %v1492_v62 = vadd.f32 %v1491_v10, %v1357_v48  ;;  %v4994_v13 = vunpack.c.h.bf16 %v3866_v63  ;;  %v1360_v10 = vmul.f32 %v1229_v50, %v4984_v58  ;;  %p2510_p4 = pnand %p2509_p12, %p5325_p13  ;;  %p2517_p10 = por %p2516_p8, %p2515_p7 }
 0x1f3   : > { %v1361_v20 = vmul.f32 %v1229_v50, %v4989_v33 }
 0x1f4   : > { %v1424_v11 = vadd.f32 %v1423_v61, %v1358_v2  ;;  %v1493_v51 = vadd.f32 %v1492_v62, %v1359_v45  ;;  %p2511_p5 = pneg %p2510_p4 }
 0x1f6   : > { %v1425_v26 = vadd.f32 %v1424_v11, %v1360_v10  ;;  %v1494_v56 = vadd.f32 %v1493_v51, %v1361_v20  ;;  %p2518_p0 = pnand %p2517_p10, %p2511_p5 }
 0x22b   : > { %v1234_v48 = vpop.permute.xlu0 %1233 }
 0x22c   : > { %v1362_v60 = vmul.f32 %v1234_v48, %v4990_v22  ;;  %v1363_v61 = vmul.f32 %v1234_v48, %v4994_v13  ;;  %v5056_v13 = vunpack.c.l.bf16 %v3424_v54 }
 0x22e   : > { %v1426_v44 = vadd.f32 %v1425_v26, %v1362_v60  ;;  %v1495_v62 = vadd.f32 %v1494_v56, %v1363_v61 }
 0x230   : > { %v1427_v2 = vrot.slane %v1426_v44, 4  ;;  %v1496_v45 = vrot.slane %v1495_v62, 4 }
 0x232   : > { %v1428_v42 = vadd.f32 %v1427_v2, %v1426_v44  ;;  %v1497_v36 = vadd.f32 %v1496_v45, %v1495_v62  ;;  %v5027_v45 = vunpack.c.l.bf16 %v3251_v38 }
 0x234   : > { %v1429_v23 = vrot.slane %v1428_v42, 2  ;;  %v1498_v58 = vrot.slane %v1497_v36, 2 }
 0x236   : > { %v1430_v4 = vadd.f32 %v1429_v23, %v1428_v42  ;;  %v1499_v49 = vadd.f32 %v1498_v58, %v1497_v36  ;;  %v2608_v36 = vmov 1966171168  }
 0x238   : > { %v1431_v50 = vrot.slane %v1430_v4, 1  ;;  %v1500_v33 = vrot.slane %v1499_v49, 1 }
 0x23a   : > { %v1432_v11 = vadd.f32 %v1431_v50, %v1430_v4  ;;  %v1501_v51 = vadd.f32 %v1500_v33, %v1499_v49  ;;  %v2099_v4 = vunpack.c.l.s4 %v2608_v36  ;;  %v4993_v49 = vlaneseq }
 0x23b   : > { %v5035_v36 = vunpack.c.l.bf16 %v3285_v1 }
 0x23c   : > { %v1502_v10 = vmul.f32 0.044194173, %v1432_v11  ;;  %v1503_v20 = vmul.f32 0.044194173, %v1501_v51  ;;  %v2100_v42 = vunpack.c.0.s8 %v2099_v4  ;;  %v2102_v58 = vshrl.u32 %v4993_v49, 7 }
 0x23d   : > { %v5028_v11 = vunpack.c.h.bf16 %v3251_v38  ;;  %v5032_v38 = vunpack.c.h.bf16 %v3267_v46  ;;  %v5053_v49 = vunpack.c.l.bf16 %v3415_v34 }
 0x23e   : > { %v1504_v22 = vmax.f32 %v1502_v10, %v1503_v20  ;;  %v3889_v2 = vsub.s32 %v2100_v42, %v2102_v58  ;;  %v5037_v58 = vunpack.c.l.bf16 %v3301_v6 }
 0x240   : > { %1505 = vmax.xlane.f32.xlu1 %v1504_v22  ;;  %5026 = vst [vmem:[#allocation35_spill] sm:$0xff] %v3889_v2  ;;  %v5059_v2 = vunpack.c.l.bf16 %v3433_v15 }
 0x2c9   : > { %v1506_v63 = vpop.xlane.xlu1 %1505 }
 0x2ca   : > { %v1507_v48 = vsub.f32 %v1502_v10, %v1506_v63  ;;  %v1508_v26 = vsub.f32 %v1503_v20, %v1506_v63  ;;  %v5029_v10 = vunpack.c.l.bf16 %v3260_v43 }
 0x2cc   : > { %v1509_v56 = vmul.f32 1.442695, %v1507_v48  ;;  %v1511_v60 = vmul.f32 1.442695, %v1508_v26  ;;  %v5030_v48 = vunpack.c.h.bf16 %v3260_v43  ;;  %v5034_v43 = vunpack.c.h.bf16 %v3276_v52 }
 0x2ce   : > { %2474 = vpow2.f32 %v1509_v56  ;;  %v5031_v56 = vunpack.c.l.bf16 %v3267_v46  ;;  %v5036_v46 = vunpack.c.h.bf16 %v3285_v1  ;;  %v5040_v1 = vunpack.c.h.bf16 %v3314_v19 }
 0x2cf   : > { %2476 = vpow2.f32 %v1511_v60 }
 0x2db   : > { %v2475_v61 = vpop.eup %2474 }
 0x2dc   : > { %v2477_v44 = vpop.eup %2476 }
 0x2dd   : > { %v1513_v62 = vadd.f32 %v2477_v44, %v2475_v61 }
 0x2df   : > { %1514 = vadd.xlane.f32.xlu0 %v1513_v62 }
 0x368   : > { %v1515_v23 = vpop.xlane.xlu0 %1514 }
 0x369   : > { %2478 = vrcp.f32 %v1515_v23 }
 0x376   : > { %v2479_v22 = vpop.eup %2478 }
 0x377   : > { %v3885_v33 = vmul.f32 %v2479_v22, %v2475_v61  ;;  %v3887_v63 = vmul.f32 %v2479_v22, %v2477_v44  ;;  %v5033_v44 = vunpack.c.l.bf16 %v3276_v52  ;;  %v5038_v52 = vunpack.c.h.bf16 %v3301_v6 }
 0x378   : > { %v5042_v6 = vunpack.c.h.bf16 %v3336_v40 }
 0x379   : > { %v3894_v50 = vmul.f32 %v3885_v33, %v5027_v45  ;;  %v3899_v51 = vmul.f32 %v3887_v63, %v5028_v11  ;;  %v3904_v20 = vmul.f32 %v3885_v33, %v5029_v10  ;;  %v3909_v26 = vmul.f32 %v3887_v63, %v5030_v48 }
 0x37a   : > { %v3914_v60 = vmul.f32 %v3885_v33, %v5031_v56  ;;  %v3919_v61 = vmul.f32 %v3887_v63, %v5032_v38  ;;  %v3924_v62 = vmul.f32 %v3885_v33, %v5033_v44  ;;  %v3929_v23 = vmul.f32 %v3887_v63, %v5034_v43 }
 0x37b   : > { %v3934_v4 = vmul.f32 %v3885_v33, %v5035_v36  ;;  %v3939_v42 = vmul.f32 %v3887_v63, %v5036_v46  ;;  %v3944_v22 = vmul.f32 %v3885_v33, %v5037_v58  ;;  %v3949_v45 = vmul.f32 %v3887_v63, %v5038_v52 }
 0x37c   : > { %v5039_v11 = vunpack.c.l.bf16 %v3314_v19  ;;  %v3959_v48 = vmul.f32 %v3887_v63, %v5040_v1  ;;  %v5041_v56 = vunpack.c.l.bf16 %v3336_v40  ;;  %v3969_v44 = vmul.f32 %v3887_v63, %v5042_v6 }
 0x37d   : > { %v5043_v43 = vunpack.c.l.bf16 %v3349_v0  ;;  %v5044_v19 = vunpack.c.h.bf16 %v3349_v0  ;;  %v5045_v58 = vunpack.c.l.bf16 %v3366_v24  ;;  %v5046_v40 = vunpack.c.h.bf16 %v3366_v24 }
 0x37e   : > { %v3954_v10 = vmul.f32 %v3885_v33, %v5039_v11  ;;  %v3964_v38 = vmul.f32 %v3885_v33, %v5041_v56  ;;  %v5047_v1 = vunpack.c.l.bf16 %v3379_v37  ;;  %v5048_v0 = vunpack.c.h.bf16 %v3379_v37 }
 0x37f   : > { %v3974_v36 = vmul.f32 %v3885_v33, %v5043_v43  ;;  %v3979_v46 = vmul.f32 %v3887_v63, %v5044_v19  ;;  %v3984_v52 = vmul.f32 %v3885_v33, %v5045_v58  ;;  %v3989_v11 = vmul.f32 %v3887_v63, %v5046_v40 }
 0x380   : > { %v3994_v56 = vmul.f32 %v3885_v33, %v5047_v1  ;;  %v3999_v6 = vmul.f32 %v3887_v63, %v5048_v0  ;;  %v5049_v43 = vunpack.c.l.bf16 %v3392_v59  ;;  %v5050_v24 = vunpack.c.h.bf16 %v3392_v59 }
 0x381   : > { %v5051_v40 = vunpack.c.l.bf16 %v3405_v17  ;;  %v5052_v37 = vunpack.c.h.bf16 %v3405_v17  ;;  %v5054_v59 = vunpack.c.h.bf16 %v3415_v34  ;;  %v5057_v17 = vunpack.c.h.bf16 %v3424_v54 }
 0x382   : > { %v4004_v19 = vmul.f32 %v3885_v33, %v5049_v43  ;;  %v4009_v58 = vmul.f32 %v3887_v63, %v5050_v24  ;;  %v4024_v43 = vmul.f32 %v3885_v33, %v5053_v49  ;;  %v4044_v49 = vmul.f32 %v3885_v33, %v5059_v2 }
 0x383   : > { %v4014_v1 = vmul.f32 %v3885_v33, %v5051_v40  ;;  %v4019_v0 = vmul.f32 %v3887_v63, %v5052_v37  ;;  %v4029_v24 = vmul.f32 %v3887_v63, %v5054_v59  ;;  %v4034_v40 = vmul.f32 %v3885_v33, %v5056_v13 }
 0x384   : > { %v4039_v37 = vmul.f32 %v3887_v63, %v5057_v17  ;;  %v5060_v34 = vunpack.c.h.bf16 %v3433_v15  ;;  %v5063_v54 = vunpack.c.h.bf16 %v3442_v47  ;;  %v5066_v15 = vunpack.c.h.bf16 %v3451_v7 }
 0x385   : > { %5055 = vst [vmem:[#allocation36_spill] sm:$0xff] %v4029_v24  ;;  %v5062_v24 = vunpack.c.l.bf16 %v3442_v47  ;;  %v5069_v47 = vunpack.c.h.bf16 %v3460_v35 }
 0x386   : > { %5058 = vst [vmem:[#allocation37_spill] sm:$0xff] %v4039_v37  ;;  %v4049_v59 = vmul.f32 %v3887_v63, %v5060_v34  ;;  %v4059_v17 = vmul.f32 %v3887_v63, %v5063_v54  ;;  %v5065_v37 = vunpack.c.l.bf16 %v3451_v7  ;;  %v4069_v34 = vmul.f32 %v3887_v63, %v5066_v15 }
 0x387   : > { %v4054_v13 = vmul.f32 %v3885_v33, %v5062_v24  ;;  %v4079_v54 = vmul.f32 %v3887_v63, %v5069_v47  ;;  %v5072_v7 = vunpack.c.h.bf16 %v3469_v53 }
 0x388   : > { %5061 = vst [vmem:[#allocation38_spill] sm:$0xff] %v4049_v59  ;;  %5064 = vst [vmem:[#allocation39_spill] sm:$0xff] %v4059_v17  ;;  %v4064_v2 = vmul.f32 %v3885_v33, %v5065_v37  ;;  %v5068_v59 = vunpack.c.l.bf16 %v3460_v35  ;;  %v5071_v17 = vunpack.c.l.bf16 %v3469_v53  ;;  %v5075_v35 = vunpack.c.h.bf16 %v3478_v29 }
 0x389   : > { %5067 = vst [vmem:[#allocation40_spill] sm:$0xff] %v4069_v34  ;;  %5070 = vst [vmem:[#allocation41_spill] sm:$0xff] %v4079_v54  ;;  %v4089_v15 = vmul.f32 %v3887_v63, %v5072_v7  ;;  %v5074_v34 = vunpack.c.l.bf16 %v3478_v29  ;;  %v5077_v54 = vunpack.c.l.bf16 %v3487_v41  ;;  %v5078_v53 = vunpack.c.h.bf16 %v3487_v41 }
 0x38a   : > { %v4074_v24 = vmul.f32 %v3885_v33, %v5068_v59  ;;  %v4084_v37 = vmul.f32 %v3885_v33, %v5071_v17  ;;  %v4099_v47 = vmul.f32 %v3887_v63, %v5075_v35  ;;  %v5081_v29 = vunpack.c.h.bf16 %v3498_v55 }
 0x38b   : > { %5073 = vst [vmem:[#allocation42_spill] sm:$0xff] %v4089_v15  ;;  %v4094_v59 = vmul.f32 %v3885_v33, %v5074_v34  ;;  %v4104_v17 = vmul.f32 %v3885_v33, %v5077_v54  ;;  %v4109_v7 = vmul.f32 %v3887_v63, %v5078_v53  ;;  %v5080_v15 = vunpack.c.l.bf16 %v3498_v55 }
 0x38c   : > { %5076 = vst [vmem:[#allocation43_spill] sm:$0xff] %v4099_v47  ;;  %v4119_v35 = vmul.f32 %v3887_v63, %v5081_v29  ;;  %v5083_v47 = vunpack.c.l.bf16 %v3507_v16  ;;  %v5084_v41 = vunpack.c.h.bf16 %v3507_v16  ;;  %v5087_v55 = vunpack.c.h.bf16 %v3516_v5 }
 0x38d   : > { %5079 = vst [vmem:[#allocation44_spill] sm:$0xff] %v4109_v7  ;;  %v4114_v34 = vmul.f32 %v3885_v33, %v5080_v15  ;;  %v5086_v7 = vunpack.c.l.bf16 %v3516_v5  ;;  %v5090_v16 = vunpack.c.h.bf16 %v3525_v8  ;;  %v5093_v5 = vunpack.c.h.bf16 %v3534_v3 }
 0x38e   : > { %5082 = vst [vmem:[#allocation45_spill] sm:$0xff] %v4119_v35  ;;  %v4124_v54 = vmul.f32 %v3885_v33, %v5083_v47  ;;  %v4129_v53 = vmul.f32 %v3887_v63, %v5084_v41  ;;  %v4139_v29 = vmul.f32 %v3887_v63, %v5087_v55  ;;  %v5089_v35 = vunpack.c.l.bf16 %v3525_v8 }
 0x38f   : > { %v4134_v15 = vmul.f32 %v3885_v33, %v5086_v7  ;;  %v4149_v41 = vmul.f32 %v3887_v63, %v5090_v16  ;;  %v4159_v55 = vmul.f32 %v3887_v63, %v5093_v5  ;;  %v5096_v8 = vunpack.c.h.bf16 %v3543_v28 }
 0x390   : > { %5085 = vst [vmem:[#allocation46_spill] sm:$0xff] %v4129_v53  ;;  %5088 = vst [vmem:[#allocation47_spill] sm:$0xff] %v4139_v29  ;;  %v4144_v47 = vmul.f32 %v3885_v33, %v5089_v35  ;;  %v5092_v53 = vunpack.c.l.bf16 %v3534_v3  ;;  %v5095_v29 = vunpack.c.l.bf16 %v3543_v28  ;;  %v5099_v3 = vunpack.c.h.bf16 %v3548_v9 }
 0x391   : > { %5091 = vst [vmem:[#allocation48_spill] sm:$0xff] %v4149_v41  ;;  %5094 = vst [vmem:[#allocation49_spill] sm:$0xff] %v4159_v55  ;;  %v4169_v16 = vmul.f32 %v3887_v63, %v5096_v8  ;;  %v5098_v41 = vunpack.c.l.bf16 %v3548_v9  ;;  %v5101_v55 = vunpack.c.l.bf16 %v3555_v18  ;;  %v5102_v28 = vunpack.c.h.bf16 %v3555_v18 }
 0x392   : > { %v4154_v7 = vmul.f32 %v3885_v33, %v5092_v53  ;;  %v4164_v35 = vmul.f32 %v3885_v33, %v5095_v29  ;;  %v4179_v5 = vmul.f32 %v3887_v63, %v5099_v3  ;;  %v5105_v9 = vunpack.c.h.bf16 %v3560_v31 }
 0x393   : > { %5097 = vst [vmem:[#allocation50_spill] sm:$0xff] %v4169_v16  ;;  %v4174_v53 = vmul.f32 %v3885_v33, %v5098_v41  ;;  %v4184_v29 = vmul.f32 %v3885_v33, %v5101_v55  ;;  %v4189_v8 = vmul.f32 %v3887_v63, %v5102_v28  ;;  %v5104_v16 = vunpack.c.l.bf16 %v3560_v31 }
 0x394   : > { %5100 = vst [vmem:[#allocation51_spill] sm:$0xff] %v4179_v5  ;;  %v4199_v3 = vmul.f32 %v3887_v63, %v5105_v9  ;;  %v5107_v5 = vunpack.c.l.bf16 %v3580_v27  ;;  %v5108_v18 = vunpack.c.h.bf16 %v3580_v27  ;;  %v5111_v31 = vunpack.c.h.bf16 %v3587_v30 }
 0x395   : > { %5103 = vst [vmem:[#allocation52_spill] sm:$0xff] %v4189_v8  ;;  %v4194_v41 = vmul.f32 %v3885_v33, %v5104_v16  ;;  %v5110_v8 = vunpack.c.l.bf16 %v3587_v30  ;;  %v5114_v27 = vunpack.c.h.bf16 %v3596_v14  ;;  %v5117_v30 = vunpack.c.h.bf16 %v3601_v32 }
 0x396   : > { %5106 = vst [vmem:[#allocation53_spill] sm:$0xff] %v4199_v3  ;;  %v4204_v55 = vmul.f32 %v3885_v33, %v5107_v5  ;;  %v4209_v28 = vmul.f32 %v3887_v63, %v5108_v18  ;;  %v4219_v9 = vmul.f32 %v3887_v63, %v5111_v31  ;;  %v5113_v3 = vunpack.c.l.bf16 %v3596_v14 }
 0x397   : > { %v4214_v16 = vmul.f32 %v3885_v33, %v5110_v8  ;;  %v4229_v18 = vmul.f32 %v3887_v63, %v5114_v27  ;;  %v4239_v31 = vmul.f32 %v3887_v63, %v5117_v30  ;;  %v5120_v14 = vunpack.c.h.bf16 %v3606_v25 }
 0x398   : > { %5109 = vst [vmem:[#allocation54_spill] sm:$0xff] %v4209_v28  ;;  %5112 = vst [vmem:[#allocation55_spill] sm:$0xff] %v4219_v9  ;;  %v4224_v5 = vmul.f32 %v3885_v33, %v5113_v3  ;;  %v5116_v28 = vunpack.c.l.bf16 %v3601_v32  ;;  %v5119_v9 = vunpack.c.l.bf16 %v3606_v25  ;;  %v5123_v32 = vunpack.c.h.bf16 %v3625_v57 }
 0x399   : > { %5115 = vst [vmem:[#allocation56_spill] sm:$0xff] %v4229_v18  ;;  %5118 = vst [vmem:[#allocation57_spill] sm:$0xff] %v4239_v31  ;;  %v4249_v27 = vmul.f32 %v3887_v63, %v5120_v14  ;;  %v5122_v18 = vunpack.c.l.bf16 %v3625_v57  ;;  %v5125_v31 = vunpack.c.l.bf16 %v3638_v12  ;;  %v5127_v25 = vunpack.c.h.bf16 %v3638_v12 }
 0x39a   : > { %v4234_v8 = vmul.f32 %v3885_v33, %v5116_v28  ;;  %v4244_v3 = vmul.f32 %v3885_v33, %v5119_v9  ;;  %v4259_v30 = vmul.f32 %v3887_v63, %v5123_v32  ;;  %v5131_v57 = vunpack.c.h.bf16 %v3647_v21 }
 0x39b   : > { %5121 = vst [vmem:[#allocation58_spill] sm:$0xff] %v4249_v27  ;;  %v4254_v28 = vmul.f32 %v3885_v33, %v5122_v18  ;;  %v4264_v9 = vmul.f32 %v3885_v33, %v5125_v31  ;;  %v4269_v14 = vmul.f32 %v3887_v63, %v5127_v25  ;;  %v5129_v27 = vunpack.c.l.bf16 %v3647_v21 }
 0x39c   : > { %5124 = vst [vmem:[#allocation59_spill] sm:$0xff] %v4259_v30  ;;  %v4279_v32 = vmul.f32 %v3887_v63, %v5131_v57  ;;  %v5133_v30 = vunpack.c.l.bf16 %v3656_v39  ;;  %v5135_v12 = vunpack.c.h.bf16 %v3656_v39 }
 0x39d   : > { %5126 = vst [vmem:[#allocation60_spill] sm:$0xff] %v4264_v9  ;;  %5128 = vst [vmem:[#allocation61_spill] sm:$0xff] %v4269_v14  ;;  %v4274_v18 = vmul.f32 %v3885_v33, %v5129_v27  ;;  %v5137_v14 = vld [vmem:[#allocation11_spill] sm:$0xff] }
 0x39e   : > { %5132 = vst [vmem:[#allocation63_spill] sm:$0xff] %v4279_v32  ;;  %v4284_v31 = vmul.f32 %v3885_v33, %v5133_v30  ;;  %v4289_v25 = vmul.f32 %v3887_v63, %v5135_v12  ;;  %v5138_v9 = vunpack.c.l.bf16 %v5137_v14  ;;  %v5140_v21 = vunpack.c.h.bf16 %v5137_v14  ;;  %v5142_v32 = vld [vmem:[#allocation12_spill] sm:$0xff] }
 0x39f   : > { %5130 = vst [vmem:[#allocation62_spill] sm:$0xff] %v4274_v18  ;;  %v5143_v18 = vunpack.c.l.bf16 %v5142_v32  ;;  %v5145_v39 = vunpack.c.h.bf16 %v5142_v32 }
 0x3a0   : > { %5134 = vst [vmem:[#allocation64_spill] sm:$0xff] %v4284_v31  ;;  %5136 = vst [vmem:[#allocation65_spill] sm:$0xff] %v4289_v25  ;;  %v4294_v27 = vmul.f32 %v3885_v33, %v5138_v9  ;;  %v4299_v57 = vmul.f32 %v3887_v63, %v5140_v21  ;;  %v5147_v25 = vld [vmem:[#allocation13_spill] sm:$0xff] }
 0x3a1   : > { %v4304_v30 = vmul.f32 %v3885_v33, %v5143_v18  ;;  %v4309_v12 = vmul.f32 %v3887_v63, %v5145_v39  ;;  %v5148_v31 = vunpack.c.l.bf16 %v5147_v25  ;;  %v5150_v14 = vunpack.c.h.bf16 %v5147_v25 }
 0x3a2   : > { %5139 = vst [vmem:[#allocation11_spill] sm:$0xff] %v4294_v27  ;;  %5141 = vst [vmem:[#allocation66_spill] sm:$0xff] %v4299_v57  ;;  %v5152_v57 = vld [vmem:[#allocation14_spill] sm:$0xff] }
 0x3a3   : > { %5144 = vst [vmem:[#allocation12_spill] sm:$0xff] %v4304_v30  ;;  %5146 = vst [vmem:[#allocation67_spill] sm:$0xff] %v4309_v12  ;;  %v4314_v9 = vmul.f32 %v3885_v33, %v5148_v31  ;;  %v4319_v21 = vmul.f32 %v3887_v63, %v5150_v14  ;;  %v5153_v27 = vunpack.c.l.bf16 %v5152_v57  ;;  %v5155_v32 = vunpack.c.h.bf16 %v5152_v57  ;;  %v5157_v12 = vld [vmem:[#allocation15_spill] sm:$0xff] }
 0x3a4   : > { %v5158_v30 = vunpack.c.l.bf16 %v5157_v12  ;;  %v5160_v25 = vunpack.c.h.bf16 %v5157_v12 }
 0x3a5   : > { %5149 = vst [vmem:[#allocation13_spill] sm:$0xff] %v4314_v9  ;;  %5151 = vst [vmem:[#allocation68_spill] sm:$0xff] %v4319_v21  ;;  %v4324_v18 = vmul.f32 %v3885_v33, %v5153_v27  ;;  %v4329_v39 = vmul.f32 %v3887_v63, %v5155_v32  ;;  %v5162_v21 = vld [vmem:[#allocation16_spill] sm:$0xff] }
 0x3a6   : > { %v4334_v31 = vmul.f32 %v3885_v33, %v5158_v30  ;;  %v4339_v14 = vmul.f32 %v3887_v63, %v5160_v25  ;;  %v5163_v9 = vunpack.c.l.bf16 %v5162_v21  ;;  %v5165_v57 = vunpack.c.h.bf16 %v5162_v21 }
 0x3a7   : > { %5154 = vst [vmem:[#allocation14_spill] sm:$0xff] %v4324_v18  ;;  %5156 = vst [vmem:[#allocation69_spill] sm:$0xff] %v4329_v39  ;;  %v5167_v39 = vld [vmem:[#allocation17_spill] sm:$0xff] }
 0x3a8   : > { %5159 = vst [vmem:[#allocation15_spill] sm:$0xff] %v4334_v31  ;;  %5161 = vst [vmem:[#allocation70_spill] sm:$0xff] %v4339_v14  ;;  %v4344_v27 = vmul.f32 %v3885_v33, %v5163_v9  ;;  %v4349_v32 = vmul.f32 %v3887_v63, %v5165_v57  ;;  %v5168_v18 = vunpack.c.l.bf16 %v5167_v39  ;;  %v5170_v12 = vunpack.c.h.bf16 %v5167_v39  ;;  %v5172_v14 = vld [vmem:[#allocation18_spill] sm:$0xff] }
 0x3a9   : > { %v5173_v31 = vunpack.c.l.bf16 %v5172_v14  ;;  %v5175_v21 = vunpack.c.h.bf16 %v5172_v14 }
 0x3aa   : > { %5164 = vst [vmem:[#allocation16_spill] sm:$0xff] %v4344_v27  ;;  %5166 = vst [vmem:[#allocation71_spill] sm:$0xff] %v4349_v32  ;;  %v4354_v30 = vmul.f32 %v3885_v33, %v5168_v18  ;;  %v4359_v25 = vmul.f32 %v3887_v63, %v5170_v12  ;;  %v5177_v32 = vld [vmem:[#allocation19_spill] sm:$0xff] }
 0x3ab   : > { %v4364_v9 = vmul.f32 %v3885_v33, %v5173_v31  ;;  %v4369_v57 = vmul.f32 %v3887_v63, %v5175_v21  ;;  %v5178_v27 = vunpack.c.l.bf16 %v5177_v32  ;;  %v5180_v39 = vunpack.c.h.bf16 %v5177_v32 }
 0x3ac   : > { %5169 = vst [vmem:[#allocation17_spill] sm:$0xff] %v4354_v30  ;;  %5171 = vst [vmem:[#allocation72_spill] sm:$0xff] %v4359_v25  ;;  %v5182_v25 = vld [vmem:[#allocation20_spill] sm:$0xff] }
 0x3ad   : > { %5174 = vst [vmem:[#allocation18_spill] sm:$0xff] %v4364_v9  ;;  %5176 = vst [vmem:[#allocation73_spill] sm:$0xff] %v4369_v57  ;;  %v4374_v18 = vmul.f32 %v3885_v33, %v5178_v27  ;;  %v4379_v12 = vmul.f32 %v3887_v63, %v5180_v39  ;;  %v5183_v30 = vunpack.c.l.bf16 %v5182_v25  ;;  %v5185_v14 = vunpack.c.h.bf16 %v5182_v25  ;;  %v5187_v57 = vld [vmem:[#allocation21_spill] sm:$0xff] }
 0x3ae   : > { %v5188_v9 = vunpack.c.l.bf16 %v5187_v57  ;;  %v5190_v32 = vunpack.c.h.bf16 %v5187_v57 }
 0x3af   : > { %5179 = vst [vmem:[#allocation19_spill] sm:$0xff] %v4374_v18  ;;  %5181 = vst [vmem:[#allocation74_spill] sm:$0xff] %v4379_v12  ;;  %v4384_v31 = vmul.f32 %v3885_v33, %v5183_v30  ;;  %v4389_v21 = vmul.f32 %v3887_v63, %v5185_v14  ;;  %v5192_v12 = vld [vmem:[#allocation22_spill] sm:$0xff] }
 0x3b0   : > { %v4394_v27 = vmul.f32 %v3885_v33, %v5188_v9  ;;  %v4399_v39 = vmul.f32 %v3887_v63, %v5190_v32  ;;  %v5193_v18 = vunpack.c.l.bf16 %v5192_v12  ;;  %v5195_v25 = vunpack.c.h.bf16 %v5192_v12 }
 0x3b1   : > { %5184 = vst [vmem:[#allocation20_spill] sm:$0xff] %v4384_v31  ;;  %5186 = vst [vmem:[#allocation75_spill] sm:$0xff] %v4389_v21  ;;  %v5197_v21 = vld [vmem:[#allocation23_spill] sm:$0xff] }
 0x3b2   : > { %5189 = vst [vmem:[#allocation21_spill] sm:$0xff] %v4394_v27  ;;  %5191 = vst [vmem:[#allocation76_spill] sm:$0xff] %v4399_v39  ;;  %v4404_v30 = vmul.f32 %v3885_v33, %v5193_v18  ;;  %v4409_v14 = vmul.f32 %v3887_v63, %v5195_v25  ;;  %v5198_v31 = vunpack.c.l.bf16 %v5197_v21  ;;  %v5200_v57 = vunpack.c.h.bf16 %v5197_v21  ;;  %v5202_v39 = vld [vmem:[#allocation24_spill] sm:$0xff] }
 0x3b3   : > { %v5203_v27 = vunpack.c.l.bf16 %v5202_v39  ;;  %v5205_v12 = vunpack.c.h.bf16 %v5202_v39 }
 0x3b4   : > { %5194 = vst [vmem:[#allocation22_spill] sm:$0xff] %v4404_v30  ;;  %5196 = vst [vmem:[#allocation77_spill] sm:$0xff] %v4409_v14  ;;  %v4414_v9 = vmul.f32 %v3885_v33, %v5198_v31  ;;  %v4419_v32 = vmul.f32 %v3887_v63, %v5200_v57  ;;  %v5207_v14 = vld [vmem:[#allocation25_spill] sm:$0xff] }
 0x3b5   : > { %v4424_v18 = vmul.f32 %v3885_v33, %v5203_v27  ;;  %v4429_v25 = vmul.f32 %v3887_v63, %v5205_v12  ;;  %v5208_v30 = vunpack.c.l.bf16 %v5207_v14  ;;  %v5210_v21 = vunpack.c.h.bf16 %v5207_v14 }
 0x3b6   : > { %5199 = vst [vmem:[#allocation23_spill] sm:$0xff] %v4414_v9  ;;  %5201 = vst [vmem:[#allocation78_spill] sm:$0xff] %v4419_v32  ;;  %v5212_v32 = vld [vmem:[#allocation26_spill] sm:$0xff] }
 0x3b7   : > { %5204 = vst [vmem:[#allocation24_spill] sm:$0xff] %v4424_v18  ;;  %5206 = vst [vmem:[#allocation79_spill] sm:$0xff] %v4429_v25  ;;  %v4434_v31 = vmul.f32 %v3885_v33, %v5208_v30  ;;  %v4439_v57 = vmul.f32 %v3887_v63, %v5210_v21  ;;  %v5213_v9 = vunpack.c.l.bf16 %v5212_v32  ;;  %v5215_v39 = vunpack.c.h.bf16 %v5212_v32  ;;  %v5217_v25 = vld [vmem:[#allocation27_spill] sm:$0xff] }
 0x3b8   : > { %v5218_v18 = vunpack.c.l.bf16 %v5217_v25  ;;  %v5220_v14 = vunpack.c.h.bf16 %v5217_v25 }
 0x3b9   : > { %5209 = vst [vmem:[#allocation25_spill] sm:$0xff] %v4434_v31  ;;  %5211 = vst [vmem:[#allocation80_spill] sm:$0xff] %v4439_v57  ;;  %v4444_v27 = vmul.f32 %v3885_v33, %v5213_v9  ;;  %v4449_v12 = vmul.f32 %v3887_v63, %v5215_v39  ;;  %v5222_v57 = vld [vmem:[#allocation28_spill] sm:$0xff] }
 0x3ba   : > { %v4454_v30 = vmul.f32 %v3885_v33, %v5218_v18  ;;  %v4459_v21 = vmul.f32 %v3887_v63, %v5220_v14  ;;  %v5223_v31 = vunpack.c.l.bf16 %v5222_v57  ;;  %v5225_v32 = vunpack.c.h.bf16 %v5222_v57 }
 0x3bb   : > { %5214 = vst [vmem:[#allocation26_spill] sm:$0xff] %v4444_v27  ;;  %5216 = vst [vmem:[#allocation81_spill] sm:$0xff] %v4449_v12  ;;  %v5227_v12 = vld [vmem:[#allocation29_spill] sm:$0xff] }
 0x3bc   : > { %5219 = vst [vmem:[#allocation27_spill] sm:$0xff] %v4454_v30  ;;  %5221 = vst [vmem:[#allocation82_spill] sm:$0xff] %v4459_v21  ;;  %v4464_v9 = vmul.f32 %v3885_v33, %v5223_v31  ;;  %v4469_v39 = vmul.f32 %v3887_v63, %v5225_v32  ;;  %v5228_v27 = vunpack.c.l.bf16 %v5227_v12  ;;  %v5230_v25 = vunpack.c.h.bf16 %v5227_v12  ;;  %v5232_v21 = vld [vmem:[#allocation30_spill] sm:$0xff] }
 0x3bd   : > { %v5233_v30 = vunpack.c.l.bf16 %v5232_v21  ;;  %v5235_v57 = vunpack.c.h.bf16 %v5232_v21 }
 0x3be   : > { %5224 = vst [vmem:[#allocation28_spill] sm:$0xff] %v4464_v9  ;;  %5226 = vst [vmem:[#allocation83_spill] sm:$0xff] %v4469_v39  ;;  %v4474_v18 = vmul.f32 %v3885_v33, %v5228_v27  ;;  %v4479_v14 = vmul.f32 %v3887_v63, %v5230_v25  ;;  %v5237_v39 = vld [vmem:[#allocation31_spill] sm:$0xff] }
 0x3bf   : > { %v4484_v31 = vmul.f32 %v3885_v33, %v5233_v30  ;;  %v4489_v32 = vmul.f32 %v3887_v63, %v5235_v57  ;;  %v5238_v9 = vunpack.c.l.bf16 %v5237_v39  ;;  %v5240_v12 = vunpack.c.h.bf16 %v5237_v39 }
 0x3c0   : > { %5229 = vst [vmem:[#allocation29_spill] sm:$0xff] %v4474_v18  ;;  %5231 = vst [vmem:[#allocation84_spill] sm:$0xff] %v4479_v14  ;;  %v5242_v14 = vld [vmem:[#allocation32_spill] sm:$0xff] }
 0x3c1   : > { %5234 = vst [vmem:[#allocation30_spill] sm:$0xff] %v4484_v31  ;;  %5236 = vst [vmem:[#allocation85_spill] sm:$0xff] %v4489_v32  ;;  %v4494_v27 = vmul.f32 %v3885_v33, %v5238_v9  ;;  %v4499_v25 = vmul.f32 %v3887_v63, %v5240_v12  ;;  %v5243_v18 = vunpack.c.l.bf16 %v5242_v14  ;;  %v5244_v21 = vunpack.c.h.bf16 %v5242_v14  ;;  %v5245_v32 = vld [vmem:[#allocation33_spill] sm:$0xff] }
 0x3c2   : > { %v5246_v31 = vunpack.c.l.bf16 %v5245_v32  ;;  %v5247_v39 = vunpack.c.h.bf16 %v5245_v32  ;;  %v2350_v32 = vpack.c.bf16 %v3909_v26, %v3904_v20  ;;  %v2358_v20 = vpack.c.bf16 %v3989_v11, %v3984_v52  ;;  %v5258_v52 = vld [vmem:[#allocation42_spill] sm:$0xff] }
 0x3c3   : > { %5239 = vst [vmem:[#allocation31_spill] sm:$0xff] %v4494_v27  ;;  %5241 = vst [vmem:[#allocation86_spill] sm:$0xff] %v4499_v25  ;;  %v4504_v30 = vmul.f32 %v3885_v33, %v5243_v18  ;;  %v4509_v57 = vmul.f32 %v3887_v63, %v5244_v21  ;;  %v5249_v25 = vld [vmem:[#allocation34_spill] sm:$0xff]  ;;  %v2359_v26 = vpack.c.bf16 %v3999_v6, %v3994_v56  ;;  %v5259_v56 = vld [vmem:[#allocation43_spill] sm:$0xff] }
 0x3c4   : > { %v4514_v9 = vmul.f32 %v3885_v33, %v5246_v31  ;;  %v4519_v12 = vmul.f32 %v3887_v63, %v5247_v39  ;;  %v5250_v27 = vunpack.c.l.bf16 %v5249_v25  ;;  %v5251_v14 = vunpack.c.h.bf16 %v5249_v25  ;;  %2032 = vst [vmem:[%s4557_s28 + $0x8] sm:$0xff] %v2350_v32  ;;  %2040 = vst [vmem:[%s4557_s28 + $0x48] sm:$0xff] %v2358_v20  ;;  %v5270_v32 = vld [vmem:[#allocation54_spill] sm:$0xff]  ;;  %v5277_v20 = vld [vmem:[#allocation61_spill] sm:$0xff] }
 0x3c5   : > { %v2349_v31 = vpack.c.bf16 %v3899_v51, %v3894_v50  ;;  %v2351_v39 = vpack.c.bf16 %v3919_v61, %v3914_v60  ;;  %v2354_v25 = vpack.c.bf16 %v3949_v45, %v3944_v22  ;;  %v2356_v50 = vpack.c.bf16 %v3969_v44, %v3964_v38  ;;  %v5254_v22 = vld [vmem:[#allocation38_spill] sm:$0xff]  ;;  %v5256_v38 = vld [vmem:[#allocation40_spill] sm:$0xff]  ;;  %2041 = vst [vmem:[%s4557_s28 + $0x50] sm:$0xff] %v2359_v26 }
 0x3c6   : > { %5248 = vst [vmem:[#allocation32_spill] sm:$0xff] %v4519_v12  ;;  %v4524_v18 = vmul.f32 %v3885_v33, %v5250_v27  ;;  %v4529_v21 = vmul.f32 %v3887_v63, %v5251_v14  ;;  %v2352_v12 = vpack.c.bf16 %v3929_v23, %v3924_v62  ;;  %v2353_v27 = vpack.c.bf16 %v3939_v42, %v3934_v4  ;;  %v5252_v62 = vld [vmem:[#allocation36_spill] sm:$0xff]  ;;  %v5253_v4 = vld [vmem:[#allocation37_spill] sm:$0xff]  ;;  %v5278_v26 = vld [vmem:[#allocation62_spill] sm:$0xff] }
 0x3c7   : > { %v2355_v14 = vpack.c.bf16 %v3959_v48, %v3954_v10  ;;  %v2357_v51 = vpack.c.bf16 %v3979_v46, %v3974_v36  ;;  %v2360_v60 = vpack.c.bf16 %v4009_v58, %v4004_v19  ;;  %2031 = vst [vmem:[%s4557_s28] sm:$0xff] %v2349_v31  ;;  %2033 = vst [vmem:[%s4557_s28 + $0x10] sm:$0xff] %v2351_v39  ;;  %v5255_v10 = vld [vmem:[#allocation39_spill] sm:$0xff]  ;;  %v5257_v36 = vld [vmem:[#allocation41_spill] sm:$0xff] }
 0x3c8   : > { %2034 = vst [vmem:[%s4557_s28 + $0x18] sm:$0xff] %v2352_v12  ;;  %v2361_v61 = vpack.c.bf16 %v4019_v0, %v4014_v1  ;;  %v2362_v23 = vpack.c.bf16 %v5252_v62, %v4024_v43  ;;  %v2363_v42 = vpack.c.bf16 %v5253_v4, %v4034_v40  ;;  %v2364_v45 = vpack.c.bf16 %v5254_v22, %v4044_v49  ;;  %v5260_v19 = vld [vmem:[#allocation44_spill] sm:$0xff]  ;;  %v5261_v1 = vld [vmem:[#allocation45_spill] sm:$0xff]  ;;  %v5262_v43 = vld [vmem:[#allocation46_spill] sm:$0xff] }
 0x3c9   : > { %2035 = vst [vmem:[%s4557_s28 + $0x20] sm:$0xff] %v2353_v27  ;;  %2036 = vst [vmem:[%s4557_s28 + $0x28] sm:$0xff] %v2354_v25  ;;  %v2365_v48 = vpack.c.bf16 %v5255_v10, %v4054_v13  ;;  %v2366_v44 = vpack.c.bf16 %v5256_v38, %v4064_v2  ;;  %v2367_v46 = vpack.c.bf16 %v5257_v36, %v4074_v24  ;;  %v5263_v49 = vld [vmem:[#allocation47_spill] sm:$0xff]  ;;  %v5264_v2 = vld [vmem:[#allocation48_spill] sm:$0xff] }
 0x3ca   : > { %2037 = vst [vmem:[%s4557_s28 + $0x30] sm:$0xff] %v2355_v14  ;;  %2038 = vst [vmem:[%s4557_s28 + $0x38] sm:$0xff] %v2356_v50  ;;  %v2368_v11 = vpack.c.bf16 %v5258_v52, %v4084_v37  ;;  %v2369_v6 = vpack.c.bf16 %v5259_v56, %v4094_v59  ;;  %v2370_v58 = vpack.c.bf16 %v5260_v19, %v4104_v17  ;;  %v5265_v37 = vld [vmem:[#allocation49_spill] sm:$0xff]  ;;  %v5266_v17 = vld [vmem:[#allocation50_spill] sm:$0xff] }
 0x3cb   : > { %2039 = vst [vmem:[%s4557_s28 + $0x40] sm:$0xff] %v2357_v51  ;;  %2042 = vst [vmem:[%s4557_s28 + $0x58] sm:$0xff] %v2360_v60  ;;  %v2371_v0 = vpack.c.bf16 %v5261_v1, %v4114_v34  ;;  %v2372_v40 = vpack.c.bf16 %v5262_v43, %v4124_v54  ;;  %v2373_v13 = vpack.c.bf16 %v5263_v49, %v4134_v15  ;;  %v5267_v54 = vld [vmem:[#allocation51_spill] sm:$0xff]  ;;  %v5268_v12 = vld [vmem:[#allocation52_spill] sm:$0xff] }
 0x3cc   : > { %2043 = vst [vmem:[%s4557_s28 + $0x60] sm:$0xff] %v2361_v61  ;;  %2044 = vst [vmem:[%s4557_s28 + $0x68] sm:$0xff] %v2362_v23  ;;  %v2374_v24 = vpack.c.bf16 %v5264_v2, %v4144_v47  ;;  %v2375_v59 = vpack.c.bf16 %v5265_v37, %v4154_v7  ;;  %v2376_v34 = vpack.c.bf16 %v5266_v17, %v4164_v35  ;;  %v5269_v31 = vld [vmem:[#allocation53_spill] sm:$0xff]  ;;  %v5271_v39 = vld [vmem:[#allocation55_spill] sm:$0xff] }
 0x3cd   : > { %2045 = vst [vmem:[%s4557_s28 + $0x70] sm:$0xff] %v2363_v42  ;;  %2046 = vst [vmem:[%s4557_s28 + $0x78] sm:$0xff] %v2364_v45  ;;  %v2377_v15 = vpack.c.bf16 %v5267_v54, %v4174_v53  ;;  %v2378_v47 = vpack.c.bf16 %v5268_v12, %v4184_v29  ;;  %v2379_v7 = vpack.c.bf16 %v5269_v31, %v4194_v41  ;;  %v5272_v27 = vld [vmem:[#allocation56_spill] sm:$0xff]  ;;  %v5273_v25 = vld [vmem:[#allocation57_spill] sm:$0xff] }
 0x3ce   : > { %2047 = vst [vmem:[%s4557_s28 + $0x80] sm:$0xff] %v2365_v48  ;;  %2048 = vst [vmem:[%s4557_s28 + $0x88] sm:$0xff] %v2366_v44  ;;  %v2380_v35 = vpack.c.bf16 %v5270_v32, %v4204_v55  ;;  %v2381_v53 = vpack.c.bf16 %v5271_v39, %v4214_v16  ;;  %v2382_v29 = vpack.c.bf16 %v5272_v27, %v4224_v5  ;;  %v5274_v14 = vld [vmem:[#allocation58_spill] sm:$0xff]  ;;  %v5275_v50 = vld [vmem:[#allocation59_spill] sm:$0xff] }
 0x3cf   : > { %2049 = vst [vmem:[%s4557_s28 + $0x90] sm:$0xff] %v2367_v46  ;;  %2050 = vst [vmem:[%s4557_s28 + $0x98] sm:$0xff] %v2368_v11  ;;  %v2383_v41 = vpack.c.bf16 %v5273_v25, %v4234_v8  ;;  %v2384_v55 = vpack.c.bf16 %v5274_v14, %v4244_v3  ;;  %v2385_v16 = vpack.c.bf16 %v5275_v50, %v4254_v28  ;;  %v5276_v51 = vld [vmem:[#allocation60_spill] sm:$0xff]  ;;  %v5279_v8 = vld [vmem:[#allocation63_spill] sm:$0xff] }
 0x3d0   : > { %2051 = vst [vmem:[%s4557_s28 + $0xa0] sm:$0xff] %v2369_v6  ;;  %2052 = vst [vmem:[%s4557_s28 + $0xa8] sm:$0xff] %v2370_v58  ;;  %v2386_v5 = vpack.c.bf16 %v5277_v20, %v5276_v51  ;;  %v2387_v60 = vpack.c.bf16 %v5279_v8, %v5278_v26  ;;  %v5280_v61 = vld [vmem:[#allocation64_spill] sm:$0xff]  ;;  %v5281_v3 = vld [vmem:[#allocation65_spill] sm:$0xff] }
 0x3d1   : > { %2053 = vst [vmem:[%s4557_s28 + $0xb0] sm:$0xff] %v2371_v0  ;;  %2054 = vst [vmem:[%s4557_s28 + $0xb8] sm:$0xff] %v2372_v40  ;;  %v2388_v62 = vpack.c.bf16 %v5281_v3, %v5280_v61  ;;  %v5282_v23 = vld [vmem:[#allocation11_spill] sm:$0xff]  ;;  %v5283_v4 = vld [vmem:[#allocation66_spill] sm:$0xff] }
 0x3d2   : > { %2055 = vst [vmem:[%s4557_s28 + $0xc0] sm:$0xff] %v2373_v13  ;;  %2056 = vst [vmem:[%s4557_s28 + $0xc8] sm:$0xff] %v2374_v24  ;;  %v2389_v28 = vpack.c.bf16 %v5283_v4, %v5282_v23  ;;  %v5284_v42 = vld [vmem:[#allocation12_spill] sm:$0xff]  ;;  %v5285_v22 = vld [vmem:[#allocation67_spill] sm:$0xff] }
 0x3d3   : > { %2057 = vst [vmem:[%s4557_s28 + $0xd0] sm:$0xff] %v2375_v59  ;;  %2058 = vst [vmem:[%s4557_s28 + $0xd8] sm:$0xff] %v2376_v34  ;;  %v2390_v45 = vpack.c.bf16 %v5285_v22, %v5284_v42  ;;  %v5286_v10 = vld [vmem:[#allocation13_spill] sm:$0xff]  ;;  %v5287_v48 = vld [vmem:[#allocation68_spill] sm:$0xff] }
 0x3d4   : > { %2059 = vst [vmem:[%s4557_s28 + $0xe0] sm:$0xff] %v2377_v15  ;;  %2060 = vst [vmem:[%s4557_s28 + $0xe8] sm:$0xff] %v2378_v47  ;;  %v2391_v38 = vpack.c.bf16 %v5287_v48, %v5286_v10  ;;  %v5288_v44 = vld [vmem:[#allocation14_spill] sm:$0xff]  ;;  %v5289_v36 = vld [vmem:[#allocation69_spill] sm:$0xff]  ;;  %v2410_v10 = vpack.c.bf16 %v4509_v57, %v4504_v30  ;;  %v2097_v30 = vcombine.low %v3885_v33, %v3887_v63 }
 0x3d5   : > { %2061 = vst [vmem:[%s4557_s28 + $0xf0] sm:$0xff] %v2379_v7  ;;  %2062 = vst [vmem:[%s4557_s28 + $0xf8] sm:$0xff] %v2380_v35  ;;  %v2392_v46 = vpack.c.bf16 %v5289_v36, %v5288_v44  ;;  %v5290_v52 = vld [vmem:[#allocation15_spill] sm:$0xff]  ;;  %v5291_v11 = vld [vmem:[#allocation70_spill] sm:$0xff]  ;;  %v2412_v44 = vpack.c.bf16 %v4529_v21, %v4524_v18 }
 0x3d6   : > { %2063 = vst [vmem:[%s4557_s28 + $0x100] sm:$0xff] %v2381_v53  ;;  %2064 = vst [vmem:[%s4557_s28 + $0x108] sm:$0xff] %v2382_v29  ;;  %v2393_v56 = vpack.c.bf16 %v5291_v11, %v5290_v52  ;;  %v5292_v6 = vld [vmem:[#allocation16_spill] sm:$0xff]  ;;  %v5293_v19 = vld [vmem:[#allocation71_spill] sm:$0xff] }
 0x3d7   : > { %2065 = vst [vmem:[%s4557_s28 + $0x110] sm:$0xff] %v2383_v41  ;;  %2066 = vst [vmem:[%s4557_s28 + $0x118] sm:$0xff] %v2384_v55  ;;  %v2394_v58 = vpack.c.bf16 %v5293_v19, %v5292_v6  ;;  %v5294_v1 = vld [vmem:[#allocation17_spill] sm:$0xff]  ;;  %v5295_v0 = vld [vmem:[#allocation72_spill] sm:$0xff] }
 0x3d8   : > { %v2395_v43 = vpack.c.bf16 %v5295_v0, %v5294_v1  ;;  %v5296_v40 = vld [vmem:[#allocation18_spill] sm:$0xff]  ;;  %v5297_v49 = vld [vmem:[#allocation73_spill] sm:$0xff]  ;;  %2067 = vst [vmem:[%s4557_s28 + $0x120] sm:$0xff] %v2385_v16  ;;  %2068 = vst [vmem:[%s4557_s28 + $0x128] sm:$0xff] %v2386_v5 }
 0x3d9   : > { %v2396_v13 = vpack.c.bf16 %v5297_v49, %v5296_v40  ;;  %2069 = vst [vmem:[%s4557_s28 + $0x130] sm:$0xff] %v2387_v60  ;;  %2070 = vst [vmem:[%s4557_s28 + $0x138] sm:$0xff] %v2388_v62  ;;  %v5298_v2 = vld [vmem:[#allocation19_spill] sm:$0xff]  ;;  %v5299_v24 = vld [vmem:[#allocation74_spill] sm:$0xff] }
 0x3da   : > { %v2397_v37 = vpack.c.bf16 %v5299_v24, %v5298_v2  ;;  %v5300_v59 = vld [vmem:[#allocation20_spill] sm:$0xff]  ;;  %v5301_v17 = vld [vmem:[#allocation75_spill] sm:$0xff]  ;;  %v5302_v54 = vld [vmem:[#allocation21_spill] sm:$0xff]  ;;  %2071 = vst [vmem:[%s4557_s28 + $0x140] sm:$0xff] %v2389_v28 }
 0x3db   : > { %v2398_v34 = vpack.c.bf16 %v5301_v17, %v5300_v59  ;;  %v5303_v15 = vld [vmem:[#allocation76_spill] sm:$0xff]  ;;  %v5304_v47 = vld [vmem:[#allocation22_spill] sm:$0xff]  ;;  %v5305_v31 = vld [vmem:[#allocation77_spill] sm:$0xff]  ;;  %2072 = vst [vmem:[%s4557_s28 + $0x148] sm:$0xff] %v2390_v45 }
 0x3dc   : > { %v2399_v12 = vpack.c.bf16 %v5303_v15, %v5302_v54  ;;  %v2400_v7 = vpack.c.bf16 %v5305_v31, %v5304_v47  ;;  %2073 = vst [vmem:[%s4557_s28 + $0x150] sm:$0xff] %v2391_v38  ;;  %2074 = vst [vmem:[%s4557_s28 + $0x158] sm:$0xff] %v2392_v46  ;;  %v5306_v32 = vld [vmem:[#allocation23_spill] sm:$0xff]  ;;  %v5307_v35 = vld [vmem:[#allocation78_spill] sm:$0xff] }
 0x3dd   : > { %v2401_v39 = vpack.c.bf16 %v5307_v35, %v5306_v32  ;;  %v5308_v53 = vld [vmem:[#allocation24_spill] sm:$0xff]  ;;  %v5309_v27 = vld [vmem:[#allocation79_spill] sm:$0xff]  ;;  %v5310_v25 = vld [vmem:[#allocation25_spill] sm:$0xff]  ;;  %2075 = vst [vmem:[%s4557_s28 + $0x160] sm:$0xff] %v2393_v56 }
 0x3de   : > { %v2402_v29 = vpack.c.bf16 %v5309_v27, %v5308_v53  ;;  %v5311_v41 = vld [vmem:[#allocation80_spill] sm:$0xff]  ;;  %v5312_v55 = vld [vmem:[#allocation26_spill] sm:$0xff]  ;;  %v5313_v50 = vld [vmem:[#allocation81_spill] sm:$0xff]  ;;  %2076 = vst [vmem:[%s4557_s28 + $0x168] sm:$0xff] %v2394_v58 }
 0x3df   : > { %v2403_v14 = vpack.c.bf16 %v5311_v41, %v5310_v25  ;;  %v2404_v16 = vpack.c.bf16 %v5313_v50, %v5312_v55  ;;  %2077 = vst [vmem:[%s4557_s28 + $0x170] sm:$0xff] %v2395_v43  ;;  %2078 = vst [vmem:[%s4557_s28 + $0x178] sm:$0xff] %v2396_v13  ;;  %v5314_v51 = vld [vmem:[#allocation27_spill] sm:$0xff]  ;;  %v5315_v20 = vld [vmem:[#allocation82_spill] sm:$0xff] }
 0x3e0   : > { %v2405_v5 = vpack.c.bf16 %v5315_v20, %v5314_v51  ;;  %v5316_v26 = vld [vmem:[#allocation28_spill] sm:$0xff]  ;;  %v5317_v8 = vld [vmem:[#allocation83_spill] sm:$0xff]  ;;  %v5318_v61 = vld [vmem:[#allocation29_spill] sm:$0xff]  ;;  %2079 = vst [vmem:[%s4557_s28 + $0x180] sm:$0xff] %v2397_v37 }
 0x3e1   : > { %v2406_v60 = vpack.c.bf16 %v5317_v8, %v5316_v26  ;;  %v5319_v3 = vld [vmem:[#allocation84_spill] sm:$0xff]  ;;  %v5320_v23 = vld [vmem:[#allocation30_spill] sm:$0xff]  ;;  %v5321_v4 = vld [vmem:[#allocation85_spill] sm:$0xff]  ;;  %2080 = vst [vmem:[%s4557_s28 + $0x188] sm:$0xff] %v2398_v34 }
 0x3e2   : > { %v2407_v62 = vpack.c.bf16 %v5319_v3, %v5318_v61  ;;  %v2408_v28 = vpack.c.bf16 %v5321_v4, %v5320_v23  ;;  %2081 = vst [vmem:[%s4557_s28 + $0x190] sm:$0xff] %v2399_v12  ;;  %2082 = vst [vmem:[%s4557_s28 + $0x198] sm:$0xff] %v2400_v7  ;;  %v5322_v42 = vld [vmem:[#allocation31_spill] sm:$0xff]  ;;  %v5323_v22 = vld [vmem:[#allocation86_spill] sm:$0xff] }
 0x3e3   : > { %v2409_v45 = vpack.c.bf16 %v5323_v22, %v5322_v42  ;;  %v5324_v48 = vld [vmem:[#allocation32_spill] sm:$0xff]  ;;  %2083 = vst [vmem:[%s4557_s28 + $0x1a0] sm:$0xff] %v2401_v39  ;;  %2084 = vst [vmem:[%s4557_s28 + $0x1a8] sm:$0xff] %v2402_v29 }
 0x3e4   : > { %v2411_v38 = vpack.c.bf16 %v5324_v48, %v4514_v9  ;;  %2085 = vst [vmem:[%s4557_s28 + $0x1b0] sm:$0xff] %v2403_v14  ;;  %2086 = vst [vmem:[%s4557_s28 + $0x1b8] sm:$0xff] %v2404_v16 }
 0x3e5   : > { %2087 = vst [vmem:[%s4557_s28 + $0x1c0] sm:$0xff] %v2405_v5  ;;  %2088 = vst [vmem:[%s4557_s28 + $0x1c8] sm:$0xff] %v2406_v60 }
 0x3e6   : > { %2089 = vst [vmem:[%s4557_s28 + $0x1d0] sm:$0xff] %v2407_v62  ;;  %2090 = vst [vmem:[%s4557_s28 + $0x1d8] sm:$0xff] %v2408_v28 }
 0x3e7   : > { %2091 = vst [vmem:[%s4557_s28 + $0x1e0] sm:$0xff] %v2409_v45  ;;  %2092 = vst [vmem:[%s4557_s28 + $0x1e8] sm:$0xff] %v2410_v10 }
 0x3e8   : > { %2093 = vst [vmem:[%s4557_s28 + $0x1f0] sm:$0xff] %v2411_v38  ;;  %2094 = vst [vmem:[%s4557_s28 + $0x1f8] sm:$0xff] %v2412_v44 }
 0x3e9   : > { %2521 = shalt.err (!%p2518_p0)
}
 0x3ea   : > { %s2522_s28 = scalar_lea.hbm %s4701_s8, 8192  ;;  %s2526_s15 = scalar_lea.hbm %s4814_s4, 16384 }
 0x3eb   : > { %p2523_p2 = scmp.ne.s32.totalorder %s4701_s8, %s2522_s28  ;;  %p2527_p3 = scmp.lt.s32.totalorder %s4701_s8, %s4814_s4 }
 0x3ec   : > { %p2528_p6 = scmp.lt.s32.totalorder %s2526_s15, %s2522_s28 }
 0x3ed   : > { %p2524_p9 = pnand %p2523_p2, %p5325_p13 }
 0x3ee   : > { %p2529_p11 = por %p2528_p6, %p2527_p3 }
 0x3ef   : > { %p2525_p1 = pneg %p2524_p9 }
 0x3f1   : > { %p2530_p12 = pnand %p2529_p11, %p2525_p1 }
 0x3f3   : > { %2533 = shalt.err (!%p2530_p12)
}
 0x3f4   : > { %s2610_s11 = smov 128   ;;  %s2611_s17 = smov 8   ;;  %v5326_v33 = vld [vmem:[#allocation35_spill] sm:$0xff]  ;;  %v5327_v57 = vlaneseq }
 0x3f5   : > { %2417 = dma.vmem_to_hbm [thread:$0]  (%p5325_p13), %s4715_s12, 8192, %s4701_s8, %s2119_s29, %s2610_s11, %s2610_s11, %s2611_s17   ;;  %v2104_v63 = vrot.slane %v2097_v30, %v5326_v33 }
 0x3f6   : > { %vm2115_vm1 = vcmp.lt.s32.totalorder %v5327_v57, 256  ;;  %s2152_s25 = scalar_lea.hbm %s4815_s5, %s2414_s7  ;;  %s2124_s14 = scalar_lea.sflag [#allocation7], %s2740_s23 }
 0x3f7   : > { %v2111_v9 = vrot.slane %v2104_v63, %v5326_v33  ;;  %s2534_s15 = scalar_lea.vmem %s2155_s10, 32  ;;  %s2612_s12 = smov [#allocation6]  }
 0x3f8   : > { %p2535_p4 = scmp.ne.s32.totalorder %s2155_s10, %s2534_s15  ;;  %s2538_s8 = sshll.u32 %s2612_s12, 4  ;;  %s2539_s8 = int_to_ptr.vmem [resolvable:$false] %s2538_s8 }
 0x3f9   : > { %2117 = vst.msk [vmem:[%s4742_s9] sm:$0x3] %vm2115_vm1, %v2111_v9  ;;  %s2540_s29 = scalar_lea.vmem %s2539_s8, 64  ;;  %p2541_p8 = scmp.lt.s32.totalorder %s2155_s10, %s2539_s8 }
 0x3fa   : > { %p2536_p5 = pnand %p2535_p4, %p5325_p13  ;;  %p2542_p10 = scmp.lt.s32.totalorder %s2540_s29, %s2534_s15 }
 0x3fc   : > { %p2537_p7 = pneg %p2536_p5  ;;  %p2543_p0 = por %p2542_p10, %p2541_p8 }
 0x3fe   : > { %p2544_p2 = pnand %p2543_p0, %p2537_p7 }
 0x400   : > { %2547 = shalt.err (!%p2544_p2)
}
 0x401   : > { %s2548_s22 = scalar_lea.hbm %s2152_s25, 32  ;;  %s2552_s9 = scalar_lea.hbm %s4815_s5, 64 }
 0x402   : > { %p2549_p9 = scmp.ne.s32.totalorder %s2152_s25, %s2548_s22  ;;  %p2553_p6 = scmp.lt.s32.totalorder %s2152_s25, %s4815_s5 }
 0x403   : > { %p2554_p11 = scmp.lt.s32.totalorder %s2552_s9, %s2548_s22 }
 0x404   : > { %p2550_p1 = pnand %p2549_p9, %p5325_p13 }
 0x405   : > { %p2555_p12 = por %p2554_p11, %p2553_p6 }
 0x406   : > { %p2551_p3 = pneg %p2550_p1 }
 0x408   : > { %p2556_p4 = pnand %p2555_p12, %p2551_p3 }
 0x40a   : > { %2559 = shalt.err (!%p2556_p4)
}
 0x40b   : > { %2418 = dma.vmem_to_hbm [thread:$0]  (%p5325_p13), %s2155_s10, 32, %s2152_s25, %s2124_s14  }
 0x40c PF: > { %s2166_s11 = sand.u32 1, %s2590_s18   ;;  %p5328_p5 = scmp.ne.s32.totalorder %s4999_s6, 0 }
 0x40d   : > { %p5329_p7 = scmp.ge.s32.totalorder %s2602_s21, 2  ;;  %s2167_s17 = scalar_lea.sflag [#allocation4], %s2166_s11 }
 0x40f   : > { %p2426_p8 = pnand %p5329_p7, %p5328_p5 }
 0x411   : > { %p2427_p10 = pneg %p2426_p8 }
 0x413   : > { %2581 = dma.done.wait (%p2427_p10), %s2167_s17, 8192  }
 0x414   : > { %2583 = vsyncadd (%p2427_p10), %s2167_s17, 4294959104  ;;  %s2176_s26 = scalar_lea.sflag [#allocation7], %s2166_s11 }
 0x415   : > { %2585 = dma.done.wait (%p2427_p10), %s2176_s26, 32  }
 0x416   : > { %2587 = vsyncadd (%p2427_p10), %s2176_s26, 4294967264  ;;  %p22_p13 = scmp.ge.s32.totalorder %s2668_s24, 4   ;;  %s5330_s18 = smov %s2594_s19 }
 0x417   : > { %s5331_s19 = smov %s2598_s20  ;;  %s5332_s20 = smov %s2680_s27 }
 0x418   : > { %s5333_s21 = smov %s2668_s24  ;;  %24 = sbr.rel (!%p22_p13) target bundleno = 7 (0x7), region = 101 }
 0x41d   :  { %2181 = vsyncpa [#allocation3], 1 }
 0x41e   :  { %2183 = vsyncpa [#allocation3 + $0x1], 1 }
 0x41f   :  { %2184 = vsyncpa [#allocation4], 1 }
 0x420   :  { %2186 = vsyncpa [#allocation4 + $0x1], 1 }
 0x421   :  { %2187 = vsyncpa [#allocation7], 1 }
 0x422   :  { %2189 = vsyncpa [#allocation7 + $0x1], 1 }

</bundles_post_ra>
